<compile_context>
chip_gen: v6e
topology: v6e:2x2x1
jax: 0.10.0
libtpu: 0.0.40
codegen_flags: <defaults>
</compile_context>

<pallas_src>
import functools

import jax
import jax.numpy as jnp
from jax.experimental import pallas as pl
from jax.experimental.pallas import tpu as pltpu

# MXU operands are bf16 (native fast path on all gens); accumulation, biases,
# gates and LSTM cell state stay f32 (v5e VPU/EUP have no bf16 path).
MXU_DTYPE = jnp.bfloat16
_VMEM_LIMIT = 48 * 1024 * 1024
_TK_MAX = 512


def _round_up(x, m):
    return ((x + m - 1) // m) * m


# ---------------------------- matmul (conv) kernel ----------------------------

def _matmul_bias_kernel(x_ref, w_ref, b_ref, o_ref, acc_ref, *, activation):
    @pl.when(pl.program_id(1) == 0)
    def _():
        acc_ref[...] = jnp.zeros_like(acc_ref)

    acc_ref[...] += jnp.dot(x_ref[...], w_ref[...],
                            preferred_element_type=jnp.float32)

    @pl.when(pl.program_id(1) == pl.num_programs(1) - 1)
    def _():
        out = acc_ref[...] + b_ref[...]
        if activation == "relu":
            out = jnp.maximum(out, 0.0)
        o_ref[...] = out.astype(o_ref.dtype)


def matmul_bias(x, w_packed, b_packed, activation="none"):
    """x: (M, K) float.  w_packed: (K, Npad) bf16, Npad multiple of 128 (padded
    cols zero).  b_packed: (1, Npad) f32.  Returns (M, Npad) f32.  M is padded
    up to the tile (padded rows sliced off; never the tm=M / grid=1 fallback),
    K is tiled onto an 'arbitrary' grid axis with an f32 VMEM accumulator."""
    M, K = x.shape
    Kw, n_pad = w_packed.shape
    assert K == Kw and n_pad % 128 == 0

    # Cap tm at 256 (fits v5e's 16 MiB default scoped VMEM / 128x128 MXU).
    tm = 256 if M >= 256 else _round_up(max(M, 8), 8)
    m_pad = _round_up(M, tm)

    if K <= _TK_MAX:
        tk, k_pad = K, K
    else:
        tk, k_pad = _TK_MAX, _round_up(K, _TK_MAX)

    xp = x.astype(MXU_DTYPE)
    if m_pad > M or k_pad > K:
        xp = jnp.pad(xp, ((0, m_pad - M), (0, k_pad - K)))
    wp = w_packed if k_pad == K else jnp.pad(w_packed, ((0, k_pad - K), (0, 0)))

    out = pl.pallas_call(
        functools.partial(_matmul_bias_kernel, activation=activation),
        out_shape=jax.ShapeDtypeStruct((m_pad, n_pad), jnp.float32),
        grid_spec=pltpu.PrefetchScalarGridSpec(
            num_scalar_prefetch=0,
            grid=(m_pad // tm, k_pad // tk),
            in_specs=[
                pl.BlockSpec((tm, tk), lambda i, k: (i, k)),
                pl.BlockSpec((tk, n_pad), lambda i, k: (k, 0)),
                pl.BlockSpec((1, n_pad), lambda i, k: (0, 0)),
            ],
            out_specs=pl.BlockSpec((tm, n_pad), lambda i, k: (i, 0)),
            scratch_shapes=[pltpu.VMEM((tm, n_pad), jnp.float32)],
        ),
        compiler_params=pltpu.CompilerParams(
            dimension_semantics=("parallel", "arbitrary"),
            vmem_limit_bytes=_VMEM_LIMIT),
    )(xp, wp, b_packed.astype(jnp.float32))
    return out[:M] if m_pad > M else out


# ---------------------------- fused BiLSTM kernel ----------------------------

def _bilstm_kernel(x_ref, wih_ref, bih_ref, whhf_ref, whhb_ref,
                   wout_ref, bout_ref, o_ref, xp_ref, hs_ref, *, T, B, H):
    """One invocation per BidirectionalLSTM layer (grid=(1,))."""
    # Batched input projection for BOTH directions: one (T*B,Din)@(Din,8H)
    # bf16 MXU matmul (f32 accumulation + f32 bias) into a VMEM scratch.
    xp_ref[...] = (jnp.dot(x_ref[...], wih_ref[...],
                           preferred_element_type=jnp.float32) + bih_ref[...])

    whh_f = whhf_ref[...]                      # (H, 4H) bf16, gates [i,f,o|g]
    whh_b = whhb_ref[...]

    def cell(pre, h, c, whh):
        # pre: (B, 4H) f32 pre-activations; gate columns packed as [i, f, o | g]
        # so sigmoid hits one contiguous 3H slice and tanh one H slice.
        gates = pre + jnp.dot(h.astype(whh.dtype), whh,
                              preferred_element_type=jnp.float32)
        sig = jax.nn.sigmoid(gates[:, :3 * H])
        g_g = jnp.tanh(gates[:, 3 * H:])
        i_g = sig[:, 0 * H:1 * H]
        f_g = sig[:, 1 * H:2 * H]
        o_g = sig[:, 2 * H:3 * H]
        c_new = f_g * c + i_g * g_g
        h_new = o_g * jnp.tanh(c_new)
        return h_new, c_new                    # cell state / gates stay f32

    zeros = jnp.zeros((B, H), jnp.float32)
    h_f, c_f = zeros, zeros
    h_b, c_b = zeros, zeros
    # Interleaved forward/backward recurrences: the two serial dependency
    # chains are independent so the MXU/EUP work of one hides the latency of
    # the other.  Hidden states go straight into VMEM scratch (no O(T) Python
    # lists -> bounded live ranges).
    # TODO(synk): switch to lax.fori_loop(..., unroll=small) at production T.
    for t in range(T):
        tb = T - 1 - t
        h_f, c_f = cell(xp_ref[pl.ds(t * B, B), 0:4 * H], h_f, c_f, whh_f)
        h_b, c_b = cell(xp_ref[pl.ds(tb * B, B), 4 * H:8 * H], h_b, c_b, whh_b)
        hs_ref[pl.ds(t * B, B), 0:H] = h_f.astype(hs_ref.dtype)
        hs_ref[pl.ds(tb * B, B), H:2 * H] = h_b.astype(hs_ref.dtype)

    # Fused output Linear (Prediction head already folded in for the last
    # layer): ONE (T*B,2H)@(2H,Npad) matmul + one sublane/lane-dense store.
    o_ref[...] = (jnp.dot(hs_ref[...], wout_ref[...],
                          preferred_element_type=jnp.float32)
                  + bout_ref[...]).astype(o_ref.dtype)


def bilstm_layer(x2d, lp, T, B):
    """x2d: (T*B, Din) time-major-flattened activations (row = t*B + b).
    lp: packed weights from prepare_bilstm.  Returns (T*B, Npad) f32."""
    TB, Din = x2d.shape
    assert TB == T * B
    H = lp["whh_f"].shape[0]
    n_pad = lp["wout"].shape[1]

    # TODO(synk): on v7x, split the batch onto a "parallel" grid axis so both
    # TensorCores run the sequence-modeling stage.
    return pl.pallas_call(
        functools.partial(_bilstm_kernel, T=T, B=B, H=H),
        out_shape=jax.ShapeDtypeStruct((T * B, n_pad), jnp.float32),
        grid_spec=pltpu.PrefetchScalarGridSpec(
            num_scalar_prefetch=0,
            grid=(1,),
            in_specs=[
                pl.BlockSpec((T * B, Din), lambda i: (0, 0)),
                pl.BlockSpec((Din, 8 * H), lambda i: (0, 0)),
                pl.BlockSpec((1, 8 * H), lambda i: (0, 0)),
                pl.BlockSpec((H, 4 * H), lambda i: (0, 0)),
                pl.BlockSpec((H, 4 * H), lambda i: (0, 0)),
                pl.BlockSpec((2 * H, n_pad), lambda i: (0, 0)),
                pl.BlockSpec((1, n_pad), lambda i: (0, 0)),
            ],
            out_specs=pl.BlockSpec((T * B, n_pad), lambda i: (0, 0)),
            scratch_shapes=[
                pltpu.VMEM((T * B, 8 * H), jnp.float32),   # gate pre-activations
                pltpu.VMEM((T * B, 2 * H), MXU_DTYPE),     # [h_fwd | h_bwd]
            ],
        ),
        compiler_params=pltpu.CompilerParams(
            dimension_semantics=("arbitrary",),
            vmem_limit_bytes=_VMEM_LIMIT),
    )(x2d.astype(MXU_DTYPE), lp["wih"], lp["bih"],
      lp["whh_f"], lp["whh_b"], lp["wout"], lp["bout"])


# ---------------------------- one-time parameter packing ----------------------------

def _perm_gates_rows(a):
    """PyTorch nn.LSTM row order [i,f,g,o] -> [i,f,o,g] (sigmoid block first)."""
    Hh = a.shape[0] // 4
    return jnp.concatenate([a[:2 * Hh], a[3 * Hh:4 * Hh], a[2 * Hh:3 * Hh]], axis=0)


def prepare_bilstm(p, head_w=None, head_b=None):
    H = p["w_hh_f"].shape[1]
    wih = jnp.concatenate([_perm_gates_rows(p["w_ih_f"]).T,
                           _perm_gates_rows(p["w_ih_b"]).T], axis=1)   # (Din, 8H)
    bih = jnp.concatenate([_perm_gates_rows(p["b_ih_f"] + p["b_hh_f"]),
                           _perm_gates_rows(p["b_ih_b"] + p["b_hh_b"])]
                          ).reshape(1, 8 * H)
    whh_f = _perm_gates_rows(p["w_hh_f"]).T                            # (H, 4H)
    whh_b = _perm_gates_rows(p["w_hh_b"]).T

    w_out, b_out = p["w_lin"], p["b_lin"]
    if head_w is not None:                     # fold Prediction Linear (exact)
        b_out = head_w @ b_out + head_b
        w_out = head_w @ w_out
    n_out = w_out.shape[0]
    n_pad = _round_up(n_out, 128)
    wout = jnp.pad(w_out.T, ((0, 0), (0, n_pad - n_out)))              # (2H, Npad)
    bout = jnp.pad(b_out, (0, n_pad - n_out)).reshape(1, n_pad)
    return dict(wih=wih.astype(MXU_DTYPE), bih=bih.astype(jnp.float32),
                whh_f=whh_f.astype(MXU_DTYPE), whh_b=whh_b.astype(MXU_DTYPE),
                wout=wout.astype(MXU_DTYPE), bout=bout.astype(jnp.float32))


def prepare_params(params):
    """One-time weight packing (transposes, gate permutation, padding, head
    fold, bf16 casts) hoisted out of the per-call forward."""
    def conv_pack(w, b):
        cout, cin, kh, kw = w.shape
        n_pad = _round_up(cout, 128)
        wmat = w.reshape(cout, cin * kh * kw).T            # cols = (cin, tap)
        wmat = jnp.pad(wmat, ((0, 0), (0, n_pad - cout))).astype(MXU_DTYPE)
        bmat = jnp.pad(b, (0, n_pad - cout)).reshape(1, n_pad).astype(jnp.float32)
        return wmat, bmat

    c1w, c1b = conv_pack(params["conv1_w"], params["conv1_b"])
    c2w, c2b = conv_pack(params["conv2_w"], params["conv2_b"])
    return dict(
        conv1_w=c1w, conv1_b=c1b, conv2_w=c2w, conv2_b=c2b,
        lstm1=prepare_bilstm(params["lstm1"]),
        lstm2=prepare_bilstm(params["lstm2"],
                             head_w=params["pred_w"], head_b=params["pred_b"]),
    )


# ---------------------------- conv / feature extraction ----------------------------

def conv3x3_relu(x_nhwc, wmat_p, b_p, cout):
    """Same-padded 3x3 conv + ReLU in NHWC: im2col in the wrapper (tiny at
    these shapes), matmul + bias + relu on the MXU with a lane-dense output.
    Output is sliced back to the logical channel width so padding is not
    dragged through the mem-bound XLA pooling stages."""
    B, H, W, Cin = x_nhwc.shape
    xp = jnp.pad(x_nhwc, ((0, 0), (1, 1), (1, 1), (0, 0)))
    # TODO(synk): at production channel counts replace wrapper-side im2col (9x
    # HBM activation amplification) with 9 in-kernel shifted accumulating matmuls.
    patches = [xp[:, dh:dh + H, dw:dw + W, :] for dh in range(3) for dw in range(3)]
    p = jnp.stack(patches, axis=-1).reshape(B * H * W, Cin * 9)
    out = matmul_bias(p, wmat_p, b_p, activation="relu")   # (B*H*W, Npad)
    return out.reshape(B, H, W, -1)[..., :cout]


def maxpool2x2_nhwc(x):
    B, H, W, C = x.shape
    return x.reshape(B, H // 2, 2, W // 2, 2, C).max(axis=(2, 4))


# ---------------------------- model glue ----------------------------

def model_forward(x, text, packed, *, c1, c2, num_class):
    del text  # unused by the PyTorch forward (CTC-style Linear prediction)
    xh = jnp.transpose(x, (0, 2, 3, 1))        # single NCHW -> NHWC conversion
    # TODO(synk): full ResNet_FeatureExtractor (BasicBlocks + BatchNorm) is
    # approximated by a 2-stage conv/relu/maxpool stack.
    v = conv3x3_relu(xh, packed["conv1_w"], packed["conv1_b"], c1)
    v = maxpool2x2_nhwc(v)
    v = conv3x3_relu(v, packed["conv2_w"], packed["conv2_b"], c2)
    v = maxpool2x2_nhwc(v)
    # AdaptiveAvgPool2d((None,1)) on permute(0,3,1,2) + squeeze(3) == mean over H.
    pooled = jnp.mean(v, axis=1)               # (B, T=W', C)
    Bsz, T, C = pooled.shape
    seq = jnp.transpose(pooled, (1, 0, 2)).reshape(T * Bsz, C)   # time-major flat

    h1 = bilstm_layer(seq, packed["lstm1"], T, Bsz)              # (T*B, 128)
    H = packed["lstm2"]["whh_f"].shape[0]
    h1 = h1[:, :H]                             # drop lane padding between layers
    h2 = bilstm_layer(h1, packed["lstm2"], T, Bsz)               # head folded in

    pred = h2.reshape(T, Bsz, -1)[:, :, :num_class]
    return jnp.transpose(pred, (1, 0, 2))      # (B, T, num_class)


# ---------------------------- parameter init ----------------------------

def init_bilstm(key, input_size, hidden_size, output_size, scale=0.1):
    ks = jax.random.split(key, 10)
    n = lambda k, s: jax.random.normal(k, s, dtype=jnp.float32) * scale
    return dict(
        w_ih_f=n(ks[0], (4 * hidden_size, input_size)),
        w_hh_f=n(ks[1], (4 * hidden_size, hidden_size)),
        b_ih_f=n(ks[2], (4 * hidden_size,)),
        b_hh_f=n(ks[3], (4 * hidden_size,)),
        w_ih_b=n(ks[4], (4 * hidden_size, input_size)),
        w_hh_b=n(ks[5], (4 * hidden_size, hidden_size)),
        b_ih_b=n(ks[6], (4 * hidden_size,)),
        b_hh_b=n(ks[7], (4 * hidden_size,)),
        w_lin=n(ks[8], (output_size, 2 * hidden_size)),
        b_lin=n(ks[9], (output_size,)),
    )


def init_params(key, input_channel, output_channel, hidden_size, num_class):
    ks = jax.random.split(key, 8)
    n = lambda k, s: jax.random.normal(k, s, dtype=jnp.float32) * 0.1
    mid = output_channel // 2
    return dict(
        conv1_w=n(ks[0], (mid, input_channel, 3, 3)),
        conv1_b=n(ks[1], (mid,)),
        conv2_w=n(ks[2], (output_channel, mid, 3, 3)),
        conv2_b=n(ks[3], (output_channel,)),
        lstm1=init_bilstm(ks[4], output_channel, hidden_size, hidden_size),
        lstm2=init_bilstm(ks[5], hidden_size, hidden_size, hidden_size),
        pred_w=n(ks[6], (num_class, hidden_size)),
        pred_b=n(ks[7], (num_class,)),
    )


# ---------------------------- main ----------------------------

if __name__ == "__main__":
    INPUT_CHANNEL, OUTPUT_CHANNEL, HIDDEN, NUM_CLASS = 1, 32, 32, 10
    B, H_IMG, W_IMG = 2, 16, 32

    key = jax.random.PRNGKey(0)
    k_x, k_p = jax.random.split(key)
    x = jax.random.normal(k_x, (B, INPUT_CHANNEL, H_IMG, W_IMG), dtype=jnp.float32)
    text = jnp.zeros((B, 8), dtype=jnp.int32)  # unused by forward (Linear head)
    params = init_params(k_p, INPUT_CHANNEL, OUTPUT_CHANNEL, HIDDEN, NUM_CLASS)
    packed = prepare_params(params)            # one-time weight packing

    fwd = jax.jit(functools.partial(model_forward, c1=OUTPUT_CHANNEL // 2,
                                    c2=OUTPUT_CHANNEL, num_class=NUM_CLASS))
    pred = jax.block_until_ready(fwd(x, text, packed))

    T_expected = W_IMG // 4  # two 2x2 maxpools
    assert pred.shape == (B, T_expected, NUM_CLASS), pred.shape
    assert bool(jnp.all(jnp.isfinite(pred)))
    print("KERNEL_OK")
</pallas_src>

<mosaic_0001>
module attributes {stable_mosaic.version = 11 : i64} {
  func.func @_matmul_bias_kernel(%arg0: i32, %arg1: i32, %arg2: memref<256x9xbf16, #tpu.memory_space<vmem>>, %arg3: memref<9x128xbf16, #tpu.memory_space<vmem>>, %arg4: memref<1x128xf32, #tpu.memory_space<vmem>>, %arg5: memref<256x128xf32, #tpu.memory_space<vmem>>, %arg6: memref<256x128xf32, #tpu.memory_space<vmem>>) attributes {dimension_semantics = [#tpu.dimension_semantics<parallel>, #tpu.dimension_semantics<arbitrary>], iteration_bounds = array<i64: 4, 1>, scalar_prefetch = 0 : i64, scratch_operands = 1 : i64, tpu.core_type = #tpu.core_type<tc>, window_params = [{transform_indices = @transform_0, window_bounds = array<i64: 256, 9>}, {transform_indices = @transform_1, window_bounds = array<i64: 9, 128>}, {pipeline_mode = #tpu.pipeline_mode<synchronous>, transform_indices = @transform_2, window_bounds = array<i64: 1, 128>}, {transform_indices = @transform_3, window_bounds = array<i64: 256, 128>}]} {
    %c0_i32 = arith.constant 0 : i32
    %0 = arith.cmpi eq, %arg1, %c0_i32 : i32
    %1 = arith.extui %0 : i1 to i32
    %c0_i32_0 = arith.constant 0 : i32
    %2 = arith.cmpi ne, %1, %c0_i32_0 : i32
    scf.if %2 {
      %cst_10 = arith.constant 0.000000e+00 : f32
      %12 = vector.broadcast %cst_10 : f32 to vector<256x128xf32>
      %c0_11 = arith.constant 0 : index
      %c0_12 = arith.constant 0 : index
      %13 = vector.load %arg6[%c0_11, %c0_12] : memref<256x128xf32, #tpu.memory_space<vmem>>, vector<256x128xf32>
      tpu.vector_store %arg6[%c0_11, %c0_12], %12 {strides = array<i32>} : memref<256x128xf32, #tpu.memory_space<vmem>>, vector<256x128xf32>,
    } else {
    }
    %c0 = arith.constant 0 : index
    %c0_1 = arith.constant 0 : index
    %3 = vector.load %arg6[%c0, %c0_1] : memref<256x128xf32, #tpu.memory_space<vmem>>, vector<256x128xf32>
    %c0_2 = arith.constant 0 : index
    %c0_3 = arith.constant 0 : index
    %4 = vector.load %arg2[%c0_2, %c0_3] : memref<256x9xbf16, #tpu.memory_space<vmem>>, vector<256x9xbf16>
    %c0_4 = arith.constant 0 : index
    %c0_5 = arith.constant 0 : index
    %5 = vector.load %arg3[%c0_4, %c0_5] : memref<9x128xbf16, #tpu.memory_space<vmem>>, vector<9x128xbf16>
    %cst = arith.constant dense<0.000000e+00> : vector<256x128xf32>
    %6 = tpu.matmul %4, %5, %cst {dimension_numbers = #tpu.dot_dimension_numbers<[1], [0], [0], [1], [0, 0, 1, 1], [], []>} : vector<256x9xbf16>, vector<9x128xbf16>, vector<256x128xf32> -> vector<256x128xf32>
    %7 = arith.addf %3, %6 : vector<256x128xf32>
    %c0_6 = arith.constant 0 : index
    %c0_7 = arith.constant 0 : index
    %8 = vector.load %arg6[%c0_6, %c0_7] : memref<256x128xf32, #tpu.memory_space<vmem>>, vector<256x128xf32>
    tpu.vector_store %arg6[%c0_6, %c0_7], %7 {strides = array<i32>} : memref<256x128xf32, #tpu.memory_space<vmem>>, vector<256x128xf32>,
    %c0_i32_8 = arith.constant 0 : i32
    %9 = arith.cmpi eq, %arg1, %c0_i32_8 : i32
    %10 = arith.extui %9 : i1 to i32
    %c0_i32_9 = arith.constant 0 : i32
    %11 = arith.cmpi ne, %10, %c0_i32_9 : i32
    scf.if %11 {
      %c0_10 = arith.constant 0 : index
      %c0_11 = arith.constant 0 : index
      %12 = vector.load %arg6[%c0_10, %c0_11] : memref<256x128xf32, #tpu.memory_space<vmem>>, vector<256x128xf32>
      %c0_12 = arith.constant 0 : index
      %c0_13 = arith.constant 0 : index
      %13 = vector.load %arg4[%c0_12, %c0_13] : memref<1x128xf32, #tpu.memory_space<vmem>>, vector<1x128xf32>
      %14 = vector.broadcast %13 : vector<1x128xf32> to vector<256x128xf32>
      %15 = arith.addf %12, %14 : vector<256x128xf32>
      %cst_14 = arith.constant 0.000000e+00 : f32
      %16 = vector.broadcast %cst_14 : f32 to vector<256x128xf32>
      %17 = arith.maximumf %15, %16 : vector<256x128xf32>
      %c0_15 = arith.constant 0 : index
      %c0_16 = arith.constant 0 : index
      %18 = vector.load %arg5[%c0_15, %c0_16] : memref<256x128xf32, #tpu.memory_space<vmem>>, vector<256x128xf32>
      tpu.vector_store %arg5[%c0_15, %c0_16], %17 {strides = array<i32>} : memref<256x128xf32, #tpu.memory_space<vmem>>, vector<256x128xf32>,
    } else {
    }
    return
  }
  func.func @transform_0(%arg0: i32, %arg1: i32) -> (i32, i32) {
    %c0_i32 = arith.constant 0 : i32
    return %arg0, %arg1 : i32, i32
  }
  func.func @transform_1(%arg0: i32, %arg1: i32) -> (i32, i32) {
    %c0_i32 = arith.constant 0 : i32
    %c0_i32_0 = arith.constant 0 : i32
    return %arg1, %c0_i32 : i32, i32
  }
  func.func @transform_2(%arg0: i32, %arg1: i32) -> (i32, i32) {
    %c0_i32 = arith.constant 0 : i32
    %c0_i32_0 = arith.constant 0 : i32
    %c0_i32_1 = arith.constant 0 : i32
    return %c0_i32, %c0_i32_0 : i32, i32
  }
  func.func @transform_3(%arg0: i32, %arg1: i32) -> (i32, i32) {
    %c0_i32 = arith.constant 0 : i32
    %c0_i32_0 = arith.constant 0 : i32
    return %arg0, %c0_i32 : i32, i32
  }
}

module attributes {stable_mosaic.version = 11 : i64} {
  func.func @_matmul_bias_kernel(%arg0: i32, %arg1: i32, %arg2: memref<256x144xbf16, #tpu.memory_space<vmem>>, %arg3: memref<144x128xbf16, #tpu.memory_space<vmem>>, %arg4: memref<1x128xf32, #tpu.memory_space<vmem>>, %arg5: memref<256x128xf32, #tpu.memory_space<vmem>>, %arg6: memref<256x128xf32, #tpu.memory_space<vmem>>) attributes {dimension_semantics = [#tpu.dimension_semantics<parallel>, #tpu.dimension_semantics<arbitrary>], iteration_bounds = array<i64: 1, 1>, scalar_prefetch = 0 : i64, scratch_operands = 1 : i64, tpu.core_type = #tpu.core_type<tc>, window_params = [{transform_indices = @transform_0, window_bounds = array<i64: 256, 144>}, {transform_indices = @transform_1, window_bounds = array<i64: 144, 128>}, {pipeline_mode = #tpu.pipeline_mode<synchronous>, transform_indices = @transform_2, window_bounds = array<i64: 1, 128>}, {transform_indices = @transform_3, window_bounds = array<i64: 256, 128>}]} {
    %c0_i32 = arith.constant 0 : i32
    %0 = arith.cmpi eq, %arg1, %c0_i32 : i32
    %1 = arith.extui %0 : i1 to i32
    %c0_i32_0 = arith.constant 0 : i32
    %2 = arith.cmpi ne, %1, %c0_i32_0 : i32
    scf.if %2 {
      %cst_10 = arith.constant 0.000000e+00 : f32
      %12 = vector.broadcast %cst_10 : f32 to vector<256x128xf32>
      %c0_11 = arith.constant 0 : index
      %c0_12 = arith.constant 0 : index
      %13 = vector.load %arg6[%c0_11, %c0_12] : memref<256x128xf32, #tpu.memory_space<vmem>>, vector<256x128xf32>
      tpu.vector_store %arg6[%c0_11, %c0_12], %12 {strides = array<i32>} : memref<256x128xf32, #tpu.memory_space<vmem>>, vector<256x128xf32>,
    } else {
    }
    %c0 = arith.constant 0 : index
    %c0_1 = arith.constant 0 : index
    %3 = vector.load %arg6[%c0, %c0_1] : memref<256x128xf32, #tpu.memory_space<vmem>>, vector<256x128xf32>
    %c0_2 = arith.constant 0 : index
    %c0_3 = arith.constant 0 : index
    %4 = vector.load %arg2[%c0_2, %c0_3] : memref<256x144xbf16, #tpu.memory_space<vmem>>, vector<256x144xbf16>
    %c0_4 = arith.constant 0 : index
    %c0_5 = arith.constant 0 : index
    %5 = vector.load %arg3[%c0_4, %c0_5] : memref<144x128xbf16, #tpu.memory_space<vmem>>, vector<144x128xbf16>
    %cst = arith.constant dense<0.000000e+00> : vector<256x128xf32>
    %6 = tpu.matmul %4, %5, %cst {dimension_numbers = #tpu.dot_dimension_numbers<[1], [0], [0], [1], [0, 0, 1, 1], [], []>} : vector<256x144xbf16>, vector<144x128xbf16>, vector<256x128xf32> -> vector<256x128xf32>
    %7 = arith.addf %3, %6 : vector<256x128xf32>
    %c0_6 = arith.constant 0 : index
    %c0_7 = arith.constant 0 : index
    %8 = vector.load %arg6[%c0_6, %c0_7] : memref<256x128xf32, #tpu.memory_space<vmem>>, vector<256x128xf32>
    tpu.vector_store %arg6[%c0_6, %c0_7], %7 {strides = array<i32>} : memref<256x128xf32, #tpu.memory_space<vmem>>, vector<256x128xf32>,
    %c0_i32_8 = arith.constant 0 : i32
    %9 = arith.cmpi eq, %arg1, %c0_i32_8 : i32
    %10 = arith.extui %9 : i1 to i32
    %c0_i32_9 = arith.constant 0 : i32
    %11 = arith.cmpi ne, %10, %c0_i32_9 : i32
    scf.if %11 {
      %c0_10 = arith.constant 0 : index
      %c0_11 = arith.constant 0 : index
      %12 = vector.load %arg6[%c0_10, %c0_11] : memref<256x128xf32, #tpu.memory_space<vmem>>, vector<256x128xf32>
      %c0_12 = arith.constant 0 : index
      %c0_13 = arith.constant 0 : index
      %13 = vector.load %arg4[%c0_12, %c0_13] : memref<1x128xf32, #tpu.memory_space<vmem>>, vector<1x128xf32>
      %14 = vector.broadcast %13 : vector<1x128xf32> to vector<256x128xf32>
      %15 = arith.addf %12, %14 : vector<256x128xf32>
      %cst_14 = arith.constant 0.000000e+00 : f32
      %16 = vector.broadcast %cst_14 : f32 to vector<256x128xf32>
      %17 = arith.maximumf %15, %16 : vector<256x128xf32>
      %c0_15 = arith.constant 0 : index
      %c0_16 = arith.constant 0 : index
      %18 = vector.load %arg5[%c0_15, %c0_16] : memref<256x128xf32, #tpu.memory_space<vmem>>, vector<256x128xf32>
      tpu.vector_store %arg5[%c0_15, %c0_16], %17 {strides = array<i32>} : memref<256x128xf32, #tpu.memory_space<vmem>>, vector<256x128xf32>,
    } else {
    }
    return
  }
  func.func @transform_0(%arg0: i32, %arg1: i32) -> (i32, i32) {
    %c0_i32 = arith.constant 0 : i32
    return %arg0, %arg1 : i32, i32
  }
  func.func @transform_1(%arg0: i32, %arg1: i32) -> (i32, i32) {
    %c0_i32 = arith.constant 0 : i32
    %c0_i32_0 = arith.constant 0 : i32
    return %arg1, %c0_i32 : i32, i32
  }
  func.func @transform_2(%arg0: i32, %arg1: i32) -> (i32, i32) {
    %c0_i32 = arith.constant 0 : i32
    %c0_i32_0 = arith.constant 0 : i32
    %c0_i32_1 = arith.constant 0 : i32
    return %c0_i32, %c0_i32_0 : i32, i32
  }
  func.func @transform_3(%arg0: i32, %arg1: i32) -> (i32, i32) {
    %c0_i32 = arith.constant 0 : i32
    %c0_i32_0 = arith.constant 0 : i32
    return %arg0, %c0_i32 : i32, i32
  }
}

module attributes {stable_mosaic.version = 11 : i64} {
  func.func @_bilstm_kernel(%arg0: i32, %arg1: memref<16x32xbf16, #tpu.memory_space<vmem>>, %arg2: memref<32x256xbf16, #tpu.memory_space<vmem>>, %arg3: memref<1x256xf32, #tpu.memory_space<vmem>>, %arg4: memref<32x128xbf16, #tpu.memory_space<vmem>>, %arg5: memref<32x128xbf16, #tpu.memory_space<vmem>>, %arg6: memref<64x128xbf16, #tpu.memory_space<vmem>>, %arg7: memref<1x128xf32, #tpu.memory_space<vmem>>, %arg8: memref<16x128xf32, #tpu.memory_space<vmem>>, %arg9: memref<16x256xf32, #tpu.memory_space<vmem>>, %arg10: memref<16x64xbf16, #tpu.memory_space<vmem>>) attributes {dimension_semantics = [#tpu.dimension_semantics<arbitrary>], iteration_bounds = array<i64: 1>, scalar_prefetch = 0 : i64, scratch_operands = 2 : i64, tpu.core_type = #tpu.core_type<tc>, window_params = [{pipeline_mode = #tpu.pipeline_mode<synchronous>, transform_indices = @transform_0, window_bounds = array<i64: 16, 32>}, {pipeline_mode = #tpu.pipeline_mode<synchronous>, transform_indices = @transform_1, window_bounds = array<i64: 32, 256>}, {pipeline_mode = #tpu.pipeline_mode<synchronous>, transform_indices = @transform_2, window_bounds = array<i64: 1, 256>}, {pipeline_mode = #tpu.pipeline_mode<synchronous>, transform_indices = @transform_3, window_bounds = array<i64: 32, 128>}, {pipeline_mode = #tpu.pipeline_mode<synchronous>, transform_indices = @transform_4, window_bounds = array<i64: 32, 128>}, {pipeline_mode = #tpu.pipeline_mode<synchronous>, transform_indices = @transform_5, window_bounds = array<i64: 64, 128>}, {pipeline_mode = #tpu.pipeline_mode<synchronous>, transform_indices = @transform_6, window_bounds = array<i64: 1, 128>}, {pipeline_mode = #tpu.pipeline_mode<synchronous>, transform_indices = @transform_7, window_bounds = array<i64: 16, 128>}]} {
    %c0 = arith.constant 0 : index
    %c0_0 = arith.constant 0 : index
    %0 = vector.load %arg1[%c0, %c0_0] : memref<16x32xbf16, #tpu.memory_space<vmem>>, vector<16x32xbf16>
    %c0_1 = arith.constant 0 : index
    %c0_2 = arith.constant 0 : index
    %1 = vector.load %arg2[%c0_1, %c0_2] : memref<32x256xbf16, #tpu.memory_space<vmem>>, vector<32x256xbf16>
    %cst = arith.constant dense<0.000000e+00> : vector<16x256xf32>
    %2 = tpu.matmul %0, %1, %cst {dimension_numbers = #tpu.dot_dimension_numbers<[1], [0], [0], [1], [0, 0, 1, 1], [], []>} : vector<16x32xbf16>, vector<32x256xbf16>, vector<16x256xf32> -> vector<16x256xf32>
    %c0_3 = arith.constant 0 : index
    %c0_4 = arith.constant 0 : index
    %3 = vector.load %arg3[%c0_3, %c0_4] : memref<1x256xf32, #tpu.memory_space<vmem>>, vector<1x256xf32>
    %4 = vector.broadcast %3 : vector<1x256xf32> to vector<16x256xf32>
    %5 = arith.addf %2, %4 : vector<16x256xf32>
    %c0_5 = arith.constant 0 : index
    %c0_6 = arith.constant 0 : index
    %6 = vector.load %arg9[%c0_5, %c0_6] : memref<16x256xf32, #tpu.memory_space<vmem>>, vector<16x256xf32>
    tpu.vector_store %arg9[%c0_5, %c0_6], %5 {strides = array<i32>} : memref<16x256xf32, #tpu.memory_space<vmem>>, vector<16x256xf32>,
    %c0_7 = arith.constant 0 : index
    %c0_8 = arith.constant 0 : index
    %7 = vector.load %arg4[%c0_7, %c0_8] : memref<32x128xbf16, #tpu.memory_space<vmem>>, vector<32x128xbf16>
    %c0_9 = arith.constant 0 : index
    %c0_10 = arith.constant 0 : index
    %8 = vector.load %arg5[%c0_9, %c0_10] : memref<32x128xbf16, #tpu.memory_space<vmem>>, vector<32x128xbf16>
    %cst_11 = arith.constant 0.000000e+00 : f32
    %9 = vector.broadcast %cst_11 : f32 to vector<2x32xf32>
    %c0_12 = arith.constant 0 : index
    %c0_13 = arith.constant 0 : index
    %10 = vector.load %arg9[%c0_12, %c0_13] : memref<16x256xf32, #tpu.memory_space<vmem>>, vector<2x128xf32>
    %11 = arith.truncf %9 : vector<2x32xf32> to vector<2x32xbf16>
    %cst_14 = arith.constant dense<0.000000e+00> : vector<2x128xf32>
    %12 = tpu.matmul %11, %7, %cst_14 {dimension_numbers = #tpu.dot_dimension_numbers<[1], [0], [0], [1], [0, 0, 1, 1], [], []>} : vector<2x32xbf16>, vector<32x128xbf16>, vector<2x128xf32> -> vector<2x128xf32>
    %13 = arith.addf %10, %12 : vector<2x128xf32>
    %14 = vector.extract_strided_slice %13 {offsets = [0, 0], sizes = [2, 96], strides = [1, 1]} : vector<2x128xf32> to vector<2x96xf32>
    %15 = arith.negf %14 : vector<2x96xf32>
    %16 = math.exp %15 : vector<2x96xf32>
    %cst_15 = arith.constant 1.000000e+00 : f32
    %17 = vector.broadcast %cst_15 : f32 to vector<2x96xf32>
    %18 = arith.addf %17, %16 : vector<2x96xf32>
    %19 = arith.divf %17, %18 : vector<2x96xf32>
    %20 = vector.extract_strided_slice %13 {offsets = [0, 96], sizes = [2, 32], strides = [1, 1]} : vector<2x128xf32> to vector<2x32xf32>
    %21 = math.tanh %20 : vector<2x32xf32>
    %22 = vector.extract_strided_slice %19 {offsets = [0, 0], sizes = [2, 32], strides = [1, 1]} : vector<2x96xf32> to vector<2x32xf32>
    %23 = vector.extract_strided_slice %19 {offsets = [0, 32], sizes = [2, 32], strides = [1, 1]} : vector<2x96xf32> to vector<2x32xf32>
    %24 = vector.extract_strided_slice %19 {offsets = [0, 64], sizes = [2, 32], strides = [1, 1]} : vector<2x96xf32> to vector<2x32xf32>
    %25 = arith.mulf %23, %9 : vector<2x32xf32>
    %26 = arith.mulf %22, %21 : vector<2x32xf32>
    %27 = arith.addf %25, %26 : vector<2x32xf32>
    %28 = math.tanh %27 : vector<2x32xf32>
    %29 = arith.mulf %24, %28 : vector<2x32xf32>
    %c14 = arith.constant 14 : index
    %c128 = arith.constant 128 : index
    %30 = vector.load %arg9[%c14, %c128] : memref<16x256xf32, #tpu.memory_space<vmem>>, vector<2x128xf32>
    %31 = arith.truncf %9 : vector<2x32xf32> to vector<2x32xbf16>
    %cst_16 = arith.constant dense<0.000000e+00> : vector<2x128xf32>
    %32 = tpu.matmul %31, %8, %cst_16 {dimension_numbers = #tpu.dot_dimension_numbers<[1], [0], [0], [1], [0, 0, 1, 1], [], []>} : vector<2x32xbf16>, vector<32x128xbf16>, vector<2x128xf32> -> vector<2x128xf32>
    %33 = arith.addf %30, %32 : vector<2x128xf32>
    %34 = vector.extract_strided_slice %33 {offsets = [0, 0], sizes = [2, 96], strides = [1, 1]} : vector<2x128xf32> to vector<2x96xf32>
    %35 = arith.negf %34 : vector<2x96xf32>
    %36 = math.exp %35 : vector<2x96xf32>
    %cst_17 = arith.constant 1.000000e+00 : f32
    %37 = vector.broadcast %cst_17 : f32 to vector<2x96xf32>
    %38 = arith.addf %37, %36 : vector<2x96xf32>
    %39 = arith.divf %37, %38 : vector<2x96xf32>
    %40 = vector.extract_strided_slice %33 {offsets = [0, 96], sizes = [2, 32], strides = [1, 1]} : vector<2x128xf32> to vector<2x32xf32>
    %41 = math.tanh %40 : vector<2x32xf32>
    %42 = vector.extract_strided_slice %39 {offsets = [0, 0], sizes = [2, 32], strides = [1, 1]} : vector<2x96xf32> to vector<2x32xf32>
    %43 = vector.extract_strided_slice %39 {offsets = [0, 32], sizes = [2, 32], strides = [1, 1]} : vector<2x96xf32> to vector<2x32xf32>
    %44 = vector.extract_strided_slice %39 {offsets = [0, 64], sizes = [2, 32], strides = [1, 1]} : vector<2x96xf32> to vector<2x32xf32>
    %45 = arith.mulf %43, %9 : vector<2x32xf32>
    %46 = arith.mulf %42, %41 : vector<2x32xf32>
    %47 = arith.addf %45, %46 : vector<2x32xf32>
    %48 = math.tanh %47 : vector<2x32xf32>
    %49 = arith.mulf %44, %48 : vector<2x32xf32>
    %50 = arith.truncf %29 : vector<2x32xf32> to vector<2x32xbf16>
    %c0_18 = arith.constant 0 : index
    %c0_19 = arith.constant 0 : index
    %51 = vector.load %arg10[%c0_18, %c0_19] : memref<16x64xbf16, #tpu.memory_space<vmem>>, vector<2x32xbf16>
    tpu.vector_store %arg10[%c0_18, %c0_19], %50 {strides = array<i32>} : memref<16x64xbf16, #tpu.memory_space<vmem>>, vector<2x32xbf16>,
    %52 = arith.truncf %49 : vector<2x32xf32> to vector<2x32xbf16>
    %c14_20 = arith.constant 14 : index
    %c32 = arith.constant 32 : index
    %53 = vector.load %arg10[%c14_20, %c32] : memref<16x64xbf16, #tpu.memory_space<vmem>>, vector<2x32xbf16>
    tpu.vector_store %arg10[%c14_20, %c32], %52 {strides = array<i32>} : memref<16x64xbf16, #tpu.memory_space<vmem>>, vector<2x32xbf16>,
    %c2 = arith.constant 2 : index
    %c0_21 = arith.constant 0 : index
    %54 = vector.load %arg9[%c2, %c0_21] : memref<16x256xf32, #tpu.memory_space<vmem>>, vector<2x128xf32>
    %55 = arith.truncf %29 : vector<2x32xf32> to vector<2x32xbf16>
    %cst_22 = arith.constant dense<0.000000e+00> : vector<2x128xf32>
    %56 = tpu.matmul %55, %7, %cst_22 {dimension_numbers = #tpu.dot_dimension_numbers<[1], [0], [0], [1], [0, 0, 1, 1], [], []>} : vector<2x32xbf16>, vector<32x128xbf16>, vector<2x128xf32> -> vector<2x128xf32>
    %57 = arith.addf %54, %56 : vector<2x128xf32>
    %58 = vector.extract_strided_slice %57 {offsets = [0, 0], sizes = [2, 96], strides = [1, 1]} : vector<2x128xf32> to vector<2x96xf32>
    %59 = arith.negf %58 : vector<2x96xf32>
    %60 = math.exp %59 : vector<2x96xf32>
    %cst_23 = arith.constant 1.000000e+00 : f32
    %61 = vector.broadcast %cst_23 : f32 to vector<2x96xf32>
    %62 = arith.addf %61, %60 : vector<2x96xf32>
    %63 = arith.divf %61, %62 : vector<2x96xf32>
    %64 = vector.extract_strided_slice %57 {offsets = [0, 96], sizes = [2, 32], strides = [1, 1]} : vector<2x128xf32> to vector<2x32xf32>
    %65 = math.tanh %64 : vector<2x32xf32>
    %66 = vector.extract_strided_slice %63 {offsets = [0, 0], sizes = [2, 32], strides = [1, 1]} : vector<2x96xf32> to vector<2x32xf32>
    %67 = vector.extract_strided_slice %63 {offsets = [0, 32], sizes = [2, 32], strides = [1, 1]} : vector<2x96xf32> to vector<2x32xf32>
    %68 = vector.extract_strided_slice %63 {offsets = [0, 64], sizes = [2, 32], strides = [1, 1]} : vector<2x96xf32> to vector<2x32xf32>
    %69 = arith.mulf %67, %27 : vector<2x32xf32>
    %70 = arith.mulf %66, %65 : vector<2x32xf32>
    %71 = arith.addf %69, %70 : vector<2x32xf32>
    %72 = math.tanh %71 : vector<2x32xf32>
    %73 = arith.mulf %68, %72 : vector<2x32xf32>
    %c12 = arith.constant 12 : index
    %c128_24 = arith.constant 128 : index
    %74 = vector.load %arg9[%c12, %c128_24] : memref<16x256xf32, #tpu.memory_space<vmem>>, vector<2x128xf32>
    %75 = arith.truncf %49 : vector<2x32xf32> to vector<2x32xbf16>
    %cst_25 = arith.constant dense<0.000000e+00> : vector<2x128xf32>
    %76 = tpu.matmul %75, %8, %cst_25 {dimension_numbers = #tpu.dot_dimension_numbers<[1], [0], [0], [1], [0, 0, 1, 1], [], []>} : vector<2x32xbf16>, vector<32x128xbf16>, vector<2x128xf32> -> vector<2x128xf32>
    %77 = arith.addf %74, %76 : vector<2x128xf32>
    %78 = vector.extract_strided_slice %77 {offsets = [0, 0], sizes = [2, 96], strides = [1, 1]} : vector<2x128xf32> to vector<2x96xf32>
    %79 = arith.negf %78 : vector<2x96xf32>
    %80 = math.exp %79 : vector<2x96xf32>
    %cst_26 = arith.constant 1.000000e+00 : f32
    %81 = vector.broadcast %cst_26 : f32 to vector<2x96xf32>
    %82 = arith.addf %81, %80 : vector<2x96xf32>
    %83 = arith.divf %81, %82 : vector<2x96xf32>
    %84 = vector.extract_strided_slice %77 {offsets = [0, 96], sizes = [2, 32], strides = [1, 1]} : vector<2x128xf32> to vector<2x32xf32>
    %85 = math.tanh %84 : vector<2x32xf32>
    %86 = vector.extract_strided_slice %83 {offsets = [0, 0], sizes = [2, 32], strides = [1, 1]} : vector<2x96xf32> to vector<2x32xf32>
    %87 = vector.extract_strided_slice %83 {offsets = [0, 32], sizes = [2, 32], strides = [1, 1]} : vector<2x96xf32> to vector<2x32xf32>
    %88 = vector.extract_strided_slice %83 {offsets = [0, 64], sizes = [2, 32], strides = [1, 1]} : vector<2x96xf32> to vector<2x32xf32>
    %89 = arith.mulf %87, %47 : vector<2x32xf32>
    %90 = arith.mulf %86, %85 : vector<2x32xf32>
    %91 = arith.addf %89, %90 : vector<2x32xf32>
    %92 = math.tanh %91 : vector<2x32xf32>
    %93 = arith.mulf %88, %92 : vector<2x32xf32>
    %94 = arith.truncf %73 : vector<2x32xf32> to vector<2x32xbf16>
    %c2_27 = arith.constant 2 : index
    %c0_28 = arith.constant 0 : index
    %95 = vector.load %arg10[%c2_27, %c0_28] : memref<16x64xbf16, #tpu.memory_space<vmem>>, vector<2x32xbf16>
    tpu.vector_store %arg10[%c2_27, %c0_28], %94 {strides = array<i32>} : memref<16x64xbf16, #tpu.memory_space<vmem>>, vector<2x32xbf16>,
    %96 = arith.truncf %93 : vector<2x32xf32> to vector<2x32xbf16>
    %c12_29 = arith.constant 12 : index
    %c32_30 = arith.constant 32 : index
    %97 = vector.load %arg10[%c12_29, %c32_30] : memref<16x64xbf16, #tpu.memory_space<vmem>>, vector<2x32xbf16>
    tpu.vector_store %arg10[%c12_29, %c32_30], %96 {strides = array<i32>} : memref<16x64xbf16, #tpu.memory_space<vmem>>, vector<2x32xbf16>,
    %c4 = arith.constant 4 : index
    %c0_31 = arith.constant 0 : index
    %98 = vector.load %arg9[%c4, %c0_31] : memref<16x256xf32, #tpu.memory_space<vmem>>, vector<2x128xf32>
    %99 = arith.truncf %73 : vector<2x32xf32> to vector<2x32xbf16>
    %cst_32 = arith.constant dense<0.000000e+00> : vector<2x128xf32>
    %100 = tpu.matmul %99, %7, %cst_32 {dimension_numbers = #tpu.dot_dimension_numbers<[1], [0], [0], [1], [0, 0, 1, 1], [], []>} : vector<2x32xbf16>, vector<32x128xbf16>, vector<2x128xf32> -> vector<2x128xf32>
    %101 = arith.addf %98, %100 : vector<2x128xf32>
    %102 = vector.extract_strided_slice %101 {offsets = [0, 0], sizes = [2, 96], strides = [1, 1]} : vector<2x128xf32> to vector<2x96xf32>
    %103 = arith.negf %102 : vector<2x96xf32>
    %104 = math.exp %103 : vector<2x96xf32>
    %cst_33 = arith.constant 1.000000e+00 : f32
    %105 = vector.broadcast %cst_33 : f32 to vector<2x96xf32>
    %106 = arith.addf %105, %104 : vector<2x96xf32>
    %107 = arith.divf %105, %106 : vector<2x96xf32>
    %108 = vector.extract_strided_slice %101 {offsets = [0, 96], sizes = [2, 32], strides = [1, 1]} : vector<2x128xf32> to vector<2x32xf32>
    %109 = math.tanh %108 : vector<2x32xf32>
    %110 = vector.extract_strided_slice %107 {offsets = [0, 0], sizes = [2, 32], strides = [1, 1]} : vector<2x96xf32> to vector<2x32xf32>
    %111 = vector.extract_strided_slice %107 {offsets = [0, 32], sizes = [2, 32], strides = [1, 1]} : vector<2x96xf32> to vector<2x32xf32>
    %112 = vector.extract_strided_slice %107 {offsets = [0, 64], sizes = [2, 32], strides = [1, 1]} : vector<2x96xf32> to vector<2x32xf32>
    %113 = arith.mulf %111, %71 : vector<2x32xf32>
    %114 = arith.mulf %110, %109 : vector<2x32xf32>
    %115 = arith.addf %113, %114 : vector<2x32xf32>
    %116 = math.tanh %115 : vector<2x32xf32>
    %117 = arith.mulf %112, %116 : vector<2x32xf32>
    %c10 = arith.constant 10 : index
    %c128_34 = arith.constant 128 : index
    %118 = vector.load %arg9[%c10, %c128_34] : memref<16x256xf32, #tpu.memory_space<vmem>>, vector<2x128xf32>
    %119 = arith.truncf %93 : vector<2x32xf32> to vector<2x32xbf16>
    %cst_35 = arith.constant dense<0.000000e+00> : vector<2x128xf32>
    %120 = tpu.matmul %119, %8, %cst_35 {dimension_numbers = #tpu.dot_dimension_numbers<[1], [0], [0], [1], [0, 0, 1, 1], [], []>} : vector<2x32xbf16>, vector<32x128xbf16>, vector<2x128xf32> -> vector<2x128xf32>
    %121 = arith.addf %118, %120 : vector<2x128xf32>
    %122 = vector.extract_strided_slice %121 {offsets = [0, 0], sizes = [2, 96], strides = [1, 1]} : vector<2x128xf32> to vector<2x96xf32>
    %123 = arith.negf %122 : vector<2x96xf32>
    %124 = math.exp %123 : vector<2x96xf32>
    %cst_36 = arith.constant 1.000000e+00 : f32
    %125 = vector.broadcast %cst_36 : f32 to vector<2x96xf32>
    %126 = arith.addf %125, %124 : vector<2x96xf32>
    %127 = arith.divf %125, %126 : vector<2x96xf32>
    %128 = vector.extract_strided_slice %121 {offsets = [0, 96], sizes = [2, 32], strides = [1, 1]} : vector<2x128xf32> to vector<2x32xf32>
    %129 = math.tanh %128 : vector<2x32xf32>
    %130 = vector.extract_strided_slice %127 {offsets = [0, 0], sizes = [2, 32], strides = [1, 1]} : vector<2x96xf32> to vector<2x32xf32>
    %131 = vector.extract_strided_slice %127 {offsets = [0, 32], sizes = [2, 32], strides = [1, 1]} : vector<2x96xf32> to vector<2x32xf32>
    %132 = vector.extract_strided_slice %127 {offsets = [0, 64], sizes = [2, 32], strides = [1, 1]} : vector<2x96xf32> to vector<2x32xf32>
    %133 = arith.mulf %131, %91 : vector<2x32xf32>
    %134 = arith.mulf %130, %129 : vector<2x32xf32>
    %135 = arith.addf %133, %134 : vector<2x32xf32>
    %136 = math.tanh %135 : vector<2x32xf32>
    %137 = arith.mulf %132, %136 : vector<2x32xf32>
    %138 = arith.truncf %117 : vector<2x32xf32> to vector<2x32xbf16>
    %c4_37 = arith.constant 4 : index
    %c0_38 = arith.constant 0 : index
    %139 = vector.load %arg10[%c4_37, %c0_38] : memref<16x64xbf16, #tpu.memory_space<vmem>>, vector<2x32xbf16>
    tpu.vector_store %arg10[%c4_37, %c0_38], %138 {strides = array<i32>} : memref<16x64xbf16, #tpu.memory_space<vmem>>, vector<2x32xbf16>,
    %140 = arith.truncf %137 : vector<2x32xf32> to vector<2x32xbf16>
    %c10_39 = arith.constant 10 : index
    %c32_40 = arith.constant 32 : index
    %141 = vector.load %arg10[%c10_39, %c32_40] : memref<16x64xbf16, #tpu.memory_space<vmem>>, vector<2x32xbf16>
    tpu.vector_store %arg10[%c10_39, %c32_40], %140 {strides = array<i32>} : memref<16x64xbf16, #tpu.memory_space<vmem>>, vector<2x32xbf16>,
    %c6 = arith.constant 6 : index
    %c0_41 = arith.constant 0 : index
    %142 = vector.load %arg9[%c6, %c0_41] : memref<16x256xf32, #tpu.memory_space<vmem>>, vector<2x128xf32>
    %143 = arith.truncf %117 : vector<2x32xf32> to vector<2x32xbf16>
    %cst_42 = arith.constant dense<0.000000e+00> : vector<2x128xf32>
    %144 = tpu.matmul %143, %7, %cst_42 {dimension_numbers = #tpu.dot_dimension_numbers<[1], [0], [0], [1], [0, 0, 1, 1], [], []>} : vector<2x32xbf16>, vector<32x128xbf16>, vector<2x128xf32> -> vector<2x128xf32>
    %145 = arith.addf %142, %144 : vector<2x128xf32>
    %146 = vector.extract_strided_slice %145 {offsets = [0, 0], sizes = [2, 96], strides = [1, 1]} : vector<2x128xf32> to vector<2x96xf32>
    %147 = arith.negf %146 : vector<2x96xf32>
    %148 = math.exp %147 : vector<2x96xf32>
    %cst_43 = arith.constant 1.000000e+00 : f32
    %149 = vector.broadcast %cst_43 : f32 to vector<2x96xf32>
    %150 = arith.addf %149, %148 : vector<2x96xf32>
    %151 = arith.divf %149, %150 : vector<2x96xf32>
    %152 = vector.extract_strided_slice %145 {offsets = [0, 96], sizes = [2, 32], strides = [1, 1]} : vector<2x128xf32> to vector<2x32xf32>
    %153 = math.tanh %152 : vector<2x32xf32>
    %154 = vector.extract_strided_slice %151 {offsets = [0, 0], sizes = [2, 32], strides = [1, 1]} : vector<2x96xf32> to vector<2x32xf32>
    %155 = vector.extract_strided_slice %151 {offsets = [0, 32], sizes = [2, 32], strides = [1, 1]} : vector<2x96xf32> to vector<2x32xf32>
    %156 = vector.extract_strided_slice %151 {offsets = [0, 64], sizes = [2, 32], strides = [1, 1]} : vector<2x96xf32> to vector<2x32xf32>
    %157 = arith.mulf %155, %115 : vector<2x32xf32>
    %158 = arith.mulf %154, %153 : vector<2x32xf32>
    %159 = arith.addf %157, %158 : vector<2x32xf32>
    %160 = math.tanh %159 : vector<2x32xf32>
    %161 = arith.mulf %156, %160 : vector<2x32xf32>
    %c8 = arith.constant 8 : index
    %c128_44 = arith.constant 128 : index
    %162 = vector.load %arg9[%c8, %c128_44] : memref<16x256xf32, #tpu.memory_space<vmem>>, vector<2x128xf32>
    %163 = arith.truncf %137 : vector<2x32xf32> to vector<2x32xbf16>
    %cst_45 = arith.constant dense<0.000000e+00> : vector<2x128xf32>
    %164 = tpu.matmul %163, %8, %cst_45 {dimension_numbers = #tpu.dot_dimension_numbers<[1], [0], [0], [1], [0, 0, 1, 1], [], []>} : vector<2x32xbf16>, vector<32x128xbf16>, vector<2x128xf32> -> vector<2x128xf32>
    %165 = arith.addf %162, %164 : vector<2x128xf32>
    %166 = vector.extract_strided_slice %165 {offsets = [0, 0], sizes = [2, 96], strides = [1, 1]} : vector<2x128xf32> to vector<2x96xf32>
    %167 = arith.negf %166 : vector<2x96xf32>
    %168 = math.exp %167 : vector<2x96xf32>
    %cst_46 = arith.constant 1.000000e+00 : f32
    %169 = vector.broadcast %cst_46 : f32 to vector<2x96xf32>
    %170 = arith.addf %169, %168 : vector<2x96xf32>
    %171 = arith.divf %169, %170 : vector<2x96xf32>
    %172 = vector.extract_strided_slice %165 {offsets = [0, 96], sizes = [2, 32], strides = [1, 1]} : vector<2x128xf32> to vector<2x32xf32>
    %173 = math.tanh %172 : vector<2x32xf32>
    %174 = vector.extract_strided_slice %171 {offsets = [0, 0], sizes = [2, 32], strides = [1, 1]} : vector<2x96xf32> to vector<2x32xf32>
    %175 = vector.extract_strided_slice %171 {offsets = [0, 32], sizes = [2, 32], strides = [1, 1]} : vector<2x96xf32> to vector<2x32xf32>
    %176 = vector.extract_strided_slice %171 {offsets = [0, 64], sizes = [2, 32], strides = [1, 1]} : vector<2x96xf32> to vector<2x32xf32>
    %177 = arith.mulf %175, %135 : vector<2x32xf32>
    %178 = arith.mulf %174, %173 : vector<2x32xf32>
    %179 = arith.addf %177, %178 : vector<2x32xf32>
    %180 = math.tanh %179 : vector<2x32xf32>
    %181 = arith.mulf %176, %180 : vector<2x32xf32>
    %182 = arith.truncf %161 : vector<2x32xf32> to vector<2x32xbf16>
    %c6_47 = arith.constant 6 : index
    %c0_48 = arith.constant 0 : index
    %183 = vector.load %arg10[%c6_47, %c0_48] : memref<16x64xbf16, #tpu.memory_space<vmem>>, vector<2x32xbf16>
    tpu.vector_store %arg10[%c6_47, %c0_48], %182 {strides = array<i32>} : memref<16x64xbf16, #tpu.memory_space<vmem>>, vector<2x32xbf16>,
    %184 = arith.truncf %181 : vector<2x32xf32> to vector<2x32xbf16>
    %c8_49 = arith.constant 8 : index
    %c32_50 = arith.constant 32 : index
    %185 = vector.load %arg10[%c8_49, %c32_50] : memref<16x64xbf16, #tpu.memory_space<vmem>>, vector<2x32xbf16>
    tpu.vector_store %arg10[%c8_49, %c32_50], %184 {strides = array<i32>} : memref<16x64xbf16, #tpu.memory_space<vmem>>, vector<2x32xbf16>,
    %c8_51 = arith.constant 8 : index
    %c0_52 = arith.constant 0 : index
    %186 = vector.load %arg9[%c8_51, %c0_52] : memref<16x256xf32, #tpu.memory_space<vmem>>, vector<2x128xf32>
    %187 = arith.truncf %161 : vector<2x32xf32> to vector<2x32xbf16>
    %cst_53 = arith.constant dense<0.000000e+00> : vector<2x128xf32>
    %188 = tpu.matmul %187, %7, %cst_53 {dimension_numbers = #tpu.dot_dimension_numbers<[1], [0], [0], [1], [0, 0, 1, 1], [], []>} : vector<2x32xbf16>, vector<32x128xbf16>, vector<2x128xf32> -> vector<2x128xf32>
    %189 = arith.addf %186, %188 : vector<2x128xf32>
    %190 = vector.extract_strided_slice %189 {offsets = [0, 0], sizes = [2, 96], strides = [1, 1]} : vector<2x128xf32> to vector<2x96xf32>
    %191 = arith.negf %190 : vector<2x96xf32>
    %192 = math.exp %191 : vector<2x96xf32>
    %cst_54 = arith.constant 1.000000e+00 : f32
    %193 = vector.broadcast %cst_54 : f32 to vector<2x96xf32>
    %194 = arith.addf %193, %192 : vector<2x96xf32>
    %195 = arith.divf %193, %194 : vector<2x96xf32>
    %196 = vector.extract_strided_slice %189 {offsets = [0, 96], sizes = [2, 32], strides = [1, 1]} : vector<2x128xf32> to vector<2x32xf32>
    %197 = math.tanh %196 : vector<2x32xf32>
    %198 = vector.extract_strided_slice %195 {offsets = [0, 0], sizes = [2, 32], strides = [1, 1]} : vector<2x96xf32> to vector<2x32xf32>
    %199 = vector.extract_strided_slice %195 {offsets = [0, 32], sizes = [2, 32], strides = [1, 1]} : vector<2x96xf32> to vector<2x32xf32>
    %200 = vector.extract_strided_slice %195 {offsets = [0, 64], sizes = [2, 32], strides = [1, 1]} : vector<2x96xf32> to vector<2x32xf32>
    %201 = arith.mulf %199, %159 : vector<2x32xf32>
    %202 = arith.mulf %198, %197 : vector<2x32xf32>
    %203 = arith.addf %201, %202 : vector<2x32xf32>
    %204 = math.tanh %203 : vector<2x32xf32>
    %205 = arith.mulf %200, %204 : vector<2x32xf32>
    %c6_55 = arith.constant 6 : index
    %c128_56 = arith.constant 128 : index
    %206 = vector.load %arg9[%c6_55, %c128_56] : memref<16x256xf32, #tpu.memory_space<vmem>>, vector<2x128xf32>
    %207 = arith.truncf %181 : vector<2x32xf32> to vector<2x32xbf16>
    %cst_57 = arith.constant dense<0.000000e+00> : vector<2x128xf32>
    %208 = tpu.matmul %207, %8, %cst_57 {dimension_numbers = #tpu.dot_dimension_numbers<[1], [0], [0], [1], [0, 0, 1, 1], [], []>} : vector<2x32xbf16>, vector<32x128xbf16>, vector<2x128xf32> -> vector<2x128xf32>
    %209 = arith.addf %206, %208 : vector<2x128xf32>
    %210 = vector.extract_strided_slice %209 {offsets = [0, 0], sizes = [2, 96], strides = [1, 1]} : vector<2x128xf32> to vector<2x96xf32>
    %211 = arith.negf %210 : vector<2x96xf32>
    %212 = math.exp %211 : vector<2x96xf32>
    %cst_58 = arith.constant 1.000000e+00 : f32
    %213 = vector.broadcast %cst_58 : f32 to vector<2x96xf32>
    %214 = arith.addf %213, %212 : vector<2x96xf32>
    %215 = arith.divf %213, %214 : vector<2x96xf32>
    %216 = vector.extract_strided_slice %209 {offsets = [0, 96], sizes = [2, 32], strides = [1, 1]} : vector<2x128xf32> to vector<2x32xf32>
    %217 = math.tanh %216 : vector<2x32xf32>
    %218 = vector.extract_strided_slice %215 {offsets = [0, 0], sizes = [2, 32], strides = [1, 1]} : vector<2x96xf32> to vector<2x32xf32>
    %219 = vector.extract_strided_slice %215 {offsets = [0, 32], sizes = [2, 32], strides = [1, 1]} : vector<2x96xf32> to vector<2x32xf32>
    %220 = vector.extract_strided_slice %215 {offsets = [0, 64], sizes = [2, 32], strides = [1, 1]} : vector<2x96xf32> to vector<2x32xf32>
    %221 = arith.mulf %219, %179 : vector<2x32xf32>
    %222 = arith.mulf %218, %217 : vector<2x32xf32>
    %223 = arith.addf %221, %222 : vector<2x32xf32>
    %224 = math.tanh %223 : vector<2x32xf32>
    %225 = arith.mulf %220, %224 : vector<2x32xf32>
    %226 = arith.truncf %205 : vector<2x32xf32> to vector<2x32xbf16>
    %c8_59 = arith.constant 8 : index
    %c0_60 = arith.constant 0 : index
    %227 = vector.load %arg10[%c8_59, %c0_60] : memref<16x64xbf16, #tpu.memory_space<vmem>>, vector<2x32xbf16>
    tpu.vector_store %arg10[%c8_59, %c0_60], %226 {strides = array<i32>} : memref<16x64xbf16, #tpu.memory_space<vmem>>, vector<2x32xbf16>,
    %228 = arith.truncf %225 : vector<2x32xf32> to vector<2x32xbf16>
    %c6_61 = arith.constant 6 : index
    %c32_62 = arith.constant 32 : index
    %229 = vector.load %arg10[%c6_61, %c32_62] : memref<16x64xbf16, #tpu.memory_space<vmem>>, vector<2x32xbf16>
    tpu.vector_store %arg10[%c6_61, %c32_62], %228 {strides = array<i32>} : memref<16x64xbf16, #tpu.memory_space<vmem>>, vector<2x32xbf16>,
    %c10_63 = arith.constant 10 : index
    %c0_64 = arith.constant 0 : index
    %230 = vector.load %arg9[%c10_63, %c0_64] : memref<16x256xf32, #tpu.memory_space<vmem>>, vector<2x128xf32>
    %231 = arith.truncf %205 : vector<2x32xf32> to vector<2x32xbf16>
    %cst_65 = arith.constant dense<0.000000e+00> : vector<2x128xf32>
    %232 = tpu.matmul %231, %7, %cst_65 {dimension_numbers = #tpu.dot_dimension_numbers<[1], [0], [0], [1], [0, 0, 1, 1], [], []>} : vector<2x32xbf16>, vector<32x128xbf16>, vector<2x128xf32> -> vector<2x128xf32>
    %233 = arith.addf %230, %232 : vector<2x128xf32>
    %234 = vector.extract_strided_slice %233 {offsets = [0, 0], sizes = [2, 96], strides = [1, 1]} : vector<2x128xf32> to vector<2x96xf32>
    %235 = arith.negf %234 : vector<2x96xf32>
    %236 = math.exp %235 : vector<2x96xf32>
    %cst_66 = arith.constant 1.000000e+00 : f32
    %237 = vector.broadcast %cst_66 : f32 to vector<2x96xf32>
    %238 = arith.addf %237, %236 : vector<2x96xf32>
    %239 = arith.divf %237, %238 : vector<2x96xf32>
    %240 = vector.extract_strided_slice %233 {offsets = [0, 96], sizes = [2, 32], strides = [1, 1]} : vector<2x128xf32> to vector<2x32xf32>
    %241 = math.tanh %240 : vector<2x32xf32>
    %242 = vector.extract_strided_slice %239 {offsets = [0, 0], sizes = [2, 32], strides = [1, 1]} : vector<2x96xf32> to vector<2x32xf32>
    %243 = vector.extract_strided_slice %239 {offsets = [0, 32], sizes = [2, 32], strides = [1, 1]} : vector<2x96xf32> to vector<2x32xf32>
    %244 = vector.extract_strided_slice %239 {offsets = [0, 64], sizes = [2, 32], strides = [1, 1]} : vector<2x96xf32> to vector<2x32xf32>
    %245 = arith.mulf %243, %203 : vector<2x32xf32>
    %246 = arith.mulf %242, %241 : vector<2x32xf32>
    %247 = arith.addf %245, %246 : vector<2x32xf32>
    %248 = math.tanh %247 : vector<2x32xf32>
    %249 = arith.mulf %244, %248 : vector<2x32xf32>
    %c4_67 = arith.constant 4 : index
    %c128_68 = arith.constant 128 : index
    %250 = vector.load %arg9[%c4_67, %c128_68] : memref<16x256xf32, #tpu.memory_space<vmem>>, vector<2x128xf32>
    %251 = arith.truncf %225 : vector<2x32xf32> to vector<2x32xbf16>
    %cst_69 = arith.constant dense<0.000000e+00> : vector<2x128xf32>
    %252 = tpu.matmul %251, %8, %cst_69 {dimension_numbers = #tpu.dot_dimension_numbers<[1], [0], [0], [1], [0, 0, 1, 1], [], []>} : vector<2x32xbf16>, vector<32x128xbf16>, vector<2x128xf32> -> vector<2x128xf32>
    %253 = arith.addf %250, %252 : vector<2x128xf32>
    %254 = vector.extract_strided_slice %253 {offsets = [0, 0], sizes = [2, 96], strides = [1, 1]} : vector<2x128xf32> to vector<2x96xf32>
    %255 = arith.negf %254 : vector<2x96xf32>
    %256 = math.exp %255 : vector<2x96xf32>
    %cst_70 = arith.constant 1.000000e+00 : f32
    %257 = vector.broadcast %cst_70 : f32 to vector<2x96xf32>
    %258 = arith.addf %257, %256 : vector<2x96xf32>
    %259 = arith.divf %257, %258 : vector<2x96xf32>
    %260 = vector.extract_strided_slice %253 {offsets = [0, 96], sizes = [2, 32], strides = [1, 1]} : vector<2x128xf32> to vector<2x32xf32>
    %261 = math.tanh %260 : vector<2x32xf32>
    %262 = vector.extract_strided_slice %259 {offsets = [0, 0], sizes = [2, 32], strides = [1, 1]} : vector<2x96xf32> to vector<2x32xf32>
    %263 = vector.extract_strided_slice %259 {offsets = [0, 32], sizes = [2, 32], strides = [1, 1]} : vector<2x96xf32> to vector<2x32xf32>
    %264 = vector.extract_strided_slice %259 {offsets = [0, 64], sizes = [2, 32], strides = [1, 1]} : vector<2x96xf32> to vector<2x32xf32>
    %265 = arith.mulf %263, %223 : vector<2x32xf32>
    %266 = arith.mulf %262, %261 : vector<2x32xf32>
    %267 = arith.addf %265, %266 : vector<2x32xf32>
    %268 = math.tanh %267 : vector<2x32xf32>
    %269 = arith.mulf %264, %268 : vector<2x32xf32>
    %270 = arith.truncf %249 : vector<2x32xf32> to vector<2x32xbf16>
    %c10_71 = arith.constant 10 : index
    %c0_72 = arith.constant 0 : index
    %271 = vector.load %arg10[%c10_71, %c0_72] : memref<16x64xbf16, #tpu.memory_space<vmem>>, vector<2x32xbf16>
    tpu.vector_store %arg10[%c10_71, %c0_72], %270 {strides = array<i32>} : memref<16x64xbf16, #tpu.memory_space<vmem>>, vector<2x32xbf16>,
    %272 = arith.truncf %269 : vector<2x32xf32> to vector<2x32xbf16>
    %c4_73 = arith.constant 4 : index
    %c32_74 = arith.constant 32 : index
    %273 = vector.load %arg10[%c4_73, %c32_74] : memref<16x64xbf16, #tpu.memory_space<vmem>>, vector<2x32xbf16>
    tpu.vector_store %arg10[%c4_73, %c32_74], %272 {strides = array<i32>} : memref<16x64xbf16, #tpu.memory_space<vmem>>, vector<2x32xbf16>,
    %c12_75 = arith.constant 12 : index
    %c0_76 = arith.constant 0 : index
    %274 = vector.load %arg9[%c12_75, %c0_76] : memref<16x256xf32, #tpu.memory_space<vmem>>, vector<2x128xf32>
    %275 = arith.truncf %249 : vector<2x32xf32> to vector<2x32xbf16>
    %cst_77 = arith.constant dense<0.000000e+00> : vector<2x128xf32>
    %276 = tpu.matmul %275, %7, %cst_77 {dimension_numbers = #tpu.dot_dimension_numbers<[1], [0], [0], [1], [0, 0, 1, 1], [], []>} : vector<2x32xbf16>, vector<32x128xbf16>, vector<2x128xf32> -> vector<2x128xf32>
    %277 = arith.addf %274, %276 : vector<2x128xf32>
    %278 = vector.extract_strided_slice %277 {offsets = [0, 0], sizes = [2, 96], strides = [1, 1]} : vector<2x128xf32> to vector<2x96xf32>
    %279 = arith.negf %278 : vector<2x96xf32>
    %280 = math.exp %279 : vector<2x96xf32>
    %cst_78 = arith.constant 1.000000e+00 : f32
    %281 = vector.broadcast %cst_78 : f32 to vector<2x96xf32>
    %282 = arith.addf %281, %280 : vector<2x96xf32>
    %283 = arith.divf %281, %282 : vector<2x96xf32>
    %284 = vector.extract_strided_slice %277 {offsets = [0, 96], sizes = [2, 32], strides = [1, 1]} : vector<2x128xf32> to vector<2x32xf32>
    %285 = math.tanh %284 : vector<2x32xf32>
    %286 = vector.extract_strided_slice %283 {offsets = [0, 0], sizes = [2, 32], strides = [1, 1]} : vector<2x96xf32> to vector<2x32xf32>
    %287 = vector.extract_strided_slice %283 {offsets = [0, 32], sizes = [2, 32], strides = [1, 1]} : vector<2x96xf32> to vector<2x32xf32>
    %288 = vector.extract_strided_slice %283 {offsets = [0, 64], sizes = [2, 32], strides = [1, 1]} : vector<2x96xf32> to vector<2x32xf32>
    %289 = arith.mulf %287, %247 : vector<2x32xf32>
    %290 = arith.mulf %286, %285 : vector<2x32xf32>
    %291 = arith.addf %289, %290 : vector<2x32xf32>
    %292 = math.tanh %291 : vector<2x32xf32>
    %293 = arith.mulf %288, %292 : vector<2x32xf32>
    %c2_79 = arith.constant 2 : index
    %c128_80 = arith.constant 128 : index
    %294 = vector.load %arg9[%c2_79, %c128_80] : memref<16x256xf32, #tpu.memory_space<vmem>>, vector<2x128xf32>
    %295 = arith.truncf %269 : vector<2x32xf32> to vector<2x32xbf16>
    %cst_81 = arith.constant dense<0.000000e+00> : vector<2x128xf32>
    %296 = tpu.matmul %295, %8, %cst_81 {dimension_numbers = #tpu.dot_dimension_numbers<[1], [0], [0], [1], [0, 0, 1, 1], [], []>} : vector<2x32xbf16>, vector<32x128xbf16>, vector<2x128xf32> -> vector<2x128xf32>
    %297 = arith.addf %294, %296 : vector<2x128xf32>
    %298 = vector.extract_strided_slice %297 {offsets = [0, 0], sizes = [2, 96], strides = [1, 1]} : vector<2x128xf32> to vector<2x96xf32>
    %299 = arith.negf %298 : vector<2x96xf32>
    %300 = math.exp %299 : vector<2x96xf32>
    %cst_82 = arith.constant 1.000000e+00 : f32
    %301 = vector.broadcast %cst_82 : f32 to vector<2x96xf32>
    %302 = arith.addf %301, %300 : vector<2x96xf32>
    %303 = arith.divf %301, %302 : vector<2x96xf32>
    %304 = vector.extract_strided_slice %297 {offsets = [0, 96], sizes = [2, 32], strides = [1, 1]} : vector<2x128xf32> to vector<2x32xf32>
    %305 = math.tanh %304 : vector<2x32xf32>
    %306 = vector.extract_strided_slice %303 {offsets = [0, 0], sizes = [2, 32], strides = [1, 1]} : vector<2x96xf32> to vector<2x32xf32>
    %307 = vector.extract_strided_slice %303 {offsets = [0, 32], sizes = [2, 32], strides = [1, 1]} : vector<2x96xf32> to vector<2x32xf32>
    %308 = vector.extract_strided_slice %303 {offsets = [0, 64], sizes = [2, 32], strides = [1, 1]} : vector<2x96xf32> to vector<2x32xf32>
    %309 = arith.mulf %307, %267 : vector<2x32xf32>
    %310 = arith.mulf %306, %305 : vector<2x32xf32>
    %311 = arith.addf %309, %310 : vector<2x32xf32>
    %312 = math.tanh %311 : vector<2x32xf32>
    %313 = arith.mulf %308, %312 : vector<2x32xf32>
    %314 = arith.truncf %293 : vector<2x32xf32> to vector<2x32xbf16>
    %c12_83 = arith.constant 12 : index
    %c0_84 = arith.constant 0 : index
    %315 = vector.load %arg10[%c12_83, %c0_84] : memref<16x64xbf16, #tpu.memory_space<vmem>>, vector<2x32xbf16>
    tpu.vector_store %arg10[%c12_83, %c0_84], %314 {strides = array<i32>} : memref<16x64xbf16, #tpu.memory_space<vmem>>, vector<2x32xbf16>,
    %316 = arith.truncf %313 : vector<2x32xf32> to vector<2x32xbf16>
    %c2_85 = arith.constant 2 : index
    %c32_86 = arith.constant 32 : index
    %317 = vector.load %arg10[%c2_85, %c32_86] : memref<16x64xbf16, #tpu.memory_space<vmem>>, vector<2x32xbf16>
    tpu.vector_store %arg10[%c2_85, %c32_86], %316 {strides = array<i32>} : memref<16x64xbf16, #tpu.memory_space<vmem>>, vector<2x32xbf16>,
    %c14_87 = arith.constant 14 : index
    %c0_88 = arith.constant 0 : index
    %318 = vector.load %arg9[%c14_87, %c0_88] : memref<16x256xf32, #tpu.memory_space<vmem>>, vector<2x128xf32>
    %319 = arith.truncf %293 : vector<2x32xf32> to vector<2x32xbf16>
    %cst_89 = arith.constant dense<0.000000e+00> : vector<2x128xf32>
    %320 = tpu.matmul %319, %7, %cst_89 {dimension_numbers = #tpu.dot_dimension_numbers<[1], [0], [0], [1], [0, 0, 1, 1], [], []>} : vector<2x32xbf16>, vector<32x128xbf16>, vector<2x128xf32> -> vector<2x128xf32>
    %321 = arith.addf %318, %320 : vector<2x128xf32>
    %322 = vector.extract_strided_slice %321 {offsets = [0, 0], sizes = [2, 96], strides = [1, 1]} : vector<2x128xf32> to vector<2x96xf32>
    %323 = arith.negf %322 : vector<2x96xf32>
    %324 = math.exp %323 : vector<2x96xf32>
    %cst_90 = arith.constant 1.000000e+00 : f32
    %325 = vector.broadcast %cst_90 : f32 to vector<2x96xf32>
    %326 = arith.addf %325, %324 : vector<2x96xf32>
    %327 = arith.divf %325, %326 : vector<2x96xf32>
    %328 = vector.extract_strided_slice %321 {offsets = [0, 96], sizes = [2, 32], strides = [1, 1]} : vector<2x128xf32> to vector<2x32xf32>
    %329 = math.tanh %328 : vector<2x32xf32>
    %330 = vector.extract_strided_slice %327 {offsets = [0, 0], sizes = [2, 32], strides = [1, 1]} : vector<2x96xf32> to vector<2x32xf32>
    %331 = vector.extract_strided_slice %327 {offsets = [0, 32], sizes = [2, 32], strides = [1, 1]} : vector<2x96xf32> to vector<2x32xf32>
    %332 = vector.extract_strided_slice %327 {offsets = [0, 64], sizes = [2, 32], strides = [1, 1]} : vector<2x96xf32> to vector<2x32xf32>
    %333 = arith.mulf %331, %291 : vector<2x32xf32>
    %334 = arith.mulf %330, %329 : vector<2x32xf32>
    %335 = arith.addf %333, %334 : vector<2x32xf32>
    %336 = math.tanh %335 : vector<2x32xf32>
    %337 = arith.mulf %332, %336 : vector<2x32xf32>
    %c0_91 = arith.constant 0 : index
    %c128_92 = arith.constant 128 : index
    %338 = vector.load %arg9[%c0_91, %c128_92] : memref<16x256xf32, #tpu.memory_space<vmem>>, vector<2x128xf32>
    %339 = arith.truncf %313 : vector<2x32xf32> to vector<2x32xbf16>
    %cst_93 = arith.constant dense<0.000000e+00> : vector<2x128xf32>
    %340 = tpu.matmul %339, %8, %cst_93 {dimension_numbers = #tpu.dot_dimension_numbers<[1], [0], [0], [1], [0, 0, 1, 1], [], []>} : vector<2x32xbf16>, vector<32x128xbf16>, vector<2x128xf32> -> vector<2x128xf32>
    %341 = arith.addf %338, %340 : vector<2x128xf32>
    %342 = vector.extract_strided_slice %341 {offsets = [0, 0], sizes = [2, 96], strides = [1, 1]} : vector<2x128xf32> to vector<2x96xf32>
    %343 = arith.negf %342 : vector<2x96xf32>
    %344 = math.exp %343 : vector<2x96xf32>
    %cst_94 = arith.constant 1.000000e+00 : f32
    %345 = vector.broadcast %cst_94 : f32 to vector<2x96xf32>
    %346 = arith.addf %345, %344 : vector<2x96xf32>
    %347 = arith.divf %345, %346 : vector<2x96xf32>
    %348 = vector.extract_strided_slice %341 {offsets = [0, 96], sizes = [2, 32], strides = [1, 1]} : vector<2x128xf32> to vector<2x32xf32>
    %349 = math.tanh %348 : vector<2x32xf32>
    %350 = vector.extract_strided_slice %347 {offsets = [0, 0], sizes = [2, 32], strides = [1, 1]} : vector<2x96xf32> to vector<2x32xf32>
    %351 = vector.extract_strided_slice %347 {offsets = [0, 32], sizes = [2, 32], strides = [1, 1]} : vector<2x96xf32> to vector<2x32xf32>
    %352 = vector.extract_strided_slice %347 {offsets = [0, 64], sizes = [2, 32], strides = [1, 1]} : vector<2x96xf32> to vector<2x32xf32>
    %353 = arith.mulf %351, %311 : vector<2x32xf32>
    %354 = arith.mulf %350, %349 : vector<2x32xf32>
    %355 = arith.addf %353, %354 : vector<2x32xf32>
    %356 = math.tanh %355 : vector<2x32xf32>
    %357 = arith.mulf %352, %356 : vector<2x32xf32>
    %358 = arith.truncf %337 : vector<2x32xf32> to vector<2x32xbf16>
    %c14_95 = arith.constant 14 : index
    %c0_96 = arith.constant 0 : index
    %359 = vector.load %arg10[%c14_95, %c0_96] : memref<16x64xbf16, #tpu.memory_space<vmem>>, vector<2x32xbf16>
    tpu.vector_store %arg10[%c14_95, %c0_96], %358 {strides = array<i32>} : memref<16x64xbf16, #tpu.memory_space<vmem>>, vector<2x32xbf16>,
    %360 = arith.truncf %357 : vector<2x32xf32> to vector<2x32xbf16>
    %c0_97 = arith.constant 0 : index
    %c32_98 = arith.constant 32 : index
    %361 = vector.load %arg10[%c0_97, %c32_98] : memref<16x64xbf16, #tpu.memory_space<vmem>>, vector<2x32xbf16>
    tpu.vector_store %arg10[%c0_97, %c32_98], %360 {strides = array<i32>} : memref<16x64xbf16, #tpu.memory_space<vmem>>, vector<2x32xbf16>,
    %c0_99 = arith.constant 0 : index
    %c0_100 = arith.constant 0 : index
    %362 = vector.load %arg10[%c0_99, %c0_100] : memref<16x64xbf16, #tpu.memory_space<vmem>>, vector<16x64xbf16>
    %c0_101 = arith.constant 0 : index
    %c0_102 = arith.constant 0 : index
    %363 = vector.load %arg6[%c0_101, %c0_102] : memref<64x128xbf16, #tpu.memory_space<vmem>>, vector<64x128xbf16>
    %cst_103 = arith.constant dense<0.000000e+00> : vector<16x128xf32>
    %364 = tpu.matmul %362, %363, %cst_103 {dimension_numbers = #tpu.dot_dimension_numbers<[1], [0], [0], [1], [0, 0, 1, 1], [], []>} : vector<16x64xbf16>, vector<64x128xbf16>, vector<16x128xf32> -> vector<16x128xf32>
    %c0_104 = arith.constant 0 : index
    %c0_105 = arith.constant 0 : index
    %365 = vector.load %arg7[%c0_104, %c0_105] : memref<1x128xf32, #tpu.memory_space<vmem>>, vector<1x128xf32>
    %366 = vector.broadcast %365 : vector<1x128xf32> to vector<16x128xf32>
    %367 = arith.addf %364, %366 : vector<16x128xf32>
    %c0_106 = arith.constant 0 : index
    %c0_107 = arith.constant 0 : index
    %368 = vector.load %arg8[%c0_106, %c0_107] : memref<16x128xf32, #tpu.memory_space<vmem>>, vector<16x128xf32>
    tpu.vector_store %arg8[%c0_106, %c0_107], %367 {strides = array<i32>} : memref<16x128xf32, #tpu.memory_space<vmem>>, vector<16x128xf32>,
    return
  }
  func.func @transform_0(%arg0: i32) -> (i32, i32) {
    %c0_i32 = arith.constant 0 : i32
    %c0_i32_0 = arith.constant 0 : i32
    %c0_i32_1 = arith.constant 0 : i32
    return %c0_i32, %c0_i32_0 : i32, i32
  }
  func.func @transform_1(%arg0: i32) -> (i32, i32) {
    %c0_i32 = arith.constant 0 : i32
    %c0_i32_0 = arith.constant 0 : i32
    %c0_i32_1 = arith.constant 0 : i32
    return %c0_i32, %c0_i32_0 : i32, i32
  }
  func.func @transform_2(%arg0: i32) -> (i32, i32) {
    %c0_i32 = arith.constant 0 : i32
    %c0_i32_0 = arith.constant 0 : i32
    %c0_i32_1 = arith.constant 0 : i32
    return %c0_i32, %c0_i32_0 : i32, i32
  }
  func.func @transform_3(%arg0: i32) -> (i32, i32) {
    %c0_i32 = arith.constant 0 : i32
    %c0_i32_0 = arith.constant 0 : i32
    %c0_i32_1 = arith.constant 0 : i32
    return %c0_i32, %c0_i32_0 : i32, i32
  }
  func.func @transform_4(%arg0: i32) -> (i32, i32) {
    %c0_i32 = arith.constant 0 : i32
    %c0_i32_0 = arith.constant 0 : i32
    %c0_i32_1 = arith.constant 0 : i32
    return %c0_i32, %c0_i32_0 : i32, i32
  }
  func.func @transform_5(%arg0: i32) -> (i32, i32) {
    %c0_i32 = arith.constant 0 : i32
    %c0_i32_0 = arith.constant 0 : i32
    %c0_i32_1 = arith.constant 0 : i32
    return %c0_i32, %c0_i32_0 : i32, i32
  }
  func.func @transform_6(%arg0: i32) -> (i32, i32) {
    %c0_i32 = arith.constant 0 : i32
    %c0_i32_0 = arith.constant 0 : i32
    %c0_i32_1 = arith.constant 0 : i32
    return %c0_i32, %c0_i32_0 : i32, i32
  }
  func.func @transform_7(%arg0: i32) -> (i32, i32) {
    %c0_i32 = arith.constant 0 : i32
    %c0_i32_0 = arith.constant 0 : i32
    %c0_i32_1 = arith.constant 0 : i32
    return %c0_i32, %c0_i32_0 : i32, i32
  }
}

</mosaic_0001>

<bundles_post_ra>
// kernel: model_forward.4
= control target key start
LH: loop header
LB: loop body
LE: loop exit
PB: predicated region body
PF: predicated region fallthrough
CT: control target
= control target key end

     0   :  { %s1095_s12 = smov 0   ;;  %s1097_s13 = smov 0   ;;  %s1240_s0 = inlined_call_operand.vmem [shape: bf16[1024,9], index: 0, kind: input, shape index: {}]   ;;  %s1241_s1 = inlined_call_operand.vmem [shape: bf16[9,128], index: 1, kind: input, shape index: {}]   ;;  %s1242_s2 = inlined_call_operand.vmem [shape: f32[1,128], index: 2, kind: input, shape index: {}]   ;;  %s1243_s3 = inlined_call_operand.vmem [shape: f32[1024,128], index: 3, kind: output, shape index: {}]  }
   0x1   :  { %s1099_s14 = smov 0  }
   0x2 LB: > { %s25_s15 = sadd.s32 1, %s1068_s13  ;;  %p914_p0 = scmp.ge.s32.totalorder %s1072_s14, 1  ;;  %s1072_s14 = sphi %s1099_s14, %s13_s14   ;;  %s1068_s13 = sphi %s1097_s13, %s1245_s13   ;;  %s1064_s12 = sphi %s1095_s12, %s1244_s12  }
   0x3   : > { %p27_p1 = scmp.ge.s32.totalorder %s25_s15, 4  ;;  %p166_p2 = scmp.lt.s32.totalorder %s1072_s14, 5 }
   0x5   : > { %s1247_s15 = smov (%p27_p1, %s25_s15), 0  ;;  %p167_p3 = pnand %p914_p0, %p166_p2 }
   0x6   : > { %s915_s18 = sshll.u32 (!%p167_p3), %s1064_s12, 5 }
   0x7   : > { %170 = sbr.rel (%p167_p3) target bundleno = 249 (0xf9), region = 32  ;;  %p199_p4 = scmp.lt.s32.totalorder (!%p167_p3), %s915_s18, 127 }
   0xc   : > { %v1033_v0 = vld [vmem:[%s1241_s1] sm:$0x1f]   ;;  %vm456_vm0 = vcmask 1043456   ;;  %vm457_vm1 = vcmask 1044480   ;;  %v1074_v1 = vmov 65535   ;;  %s1249_s18 = smov (!%p199_p4, %s915_s18), 127 }
   0xd   : > { %v458_v2 = vsel %vm456_vm0, 4294967295, %v1074_v1  ;;  %s916_s19 = sshll.u32 %s1249_s18, 2  ;;  %vm407_vm2 = vcmask 72704   ;;  %v1159_v21 = vld [vmem:[%s1242_s2] ss:$0 sm:$0xff]  ;;  %s918_s25 = sshll.u32 %s1249_s18, 3 }
   0xe   : > { %v459_v3 = vsel %vm457_vm1, %v458_v2, 0  ;;  %s1122_s22 = scalar_lea.vmem %s1240_s0, %s916_s19  ;;  %s1166_s28 = scalar_lea.vmem %s1243_s3, %s918_s25 }
   0xf   : > { %v461_v4 = vand.u32 %v1033_v0, %v459_v3  ;;  %v1034_v5 = vld [vmem:[%s1122_s22] sm:$0xff]   ;;  %v1036_v7 = vld [vmem:[%s1122_s22 + $0x8] sm:$0xff]   ;;  %v1038_v9 = vld [vmem:[%s1122_s22 + $0x10] sm:$0xff]  }
  0x10   : > { %v1035_v6 = vld [vmem:[%s1122_s22 + $0x40] sm:$0xff]   ;;  %974 = vmatprep.mubr.msk.bf16.mxu0 %vm407_vm2, %v1034_v5  ;;  %v1037_v8 = vld [vmem:[%s1122_s22 + $0x48] sm:$0xff]   ;;  %v1039_v10 = vld [vmem:[%s1122_s22 + $0x50] sm:$0xff]  }
  0x11   : > { %972 = vmatprep.subr.bf16.mxu0 %v461_v4  ;;  %1006 = vmatprep.subr.bf16.mxu1 %v461_v4  ;;  %v1040_v11 = vld [vmem:[%s1122_s22 + $0x18] sm:$0xff]   ;;  %v1042_v13 = vld [vmem:[%s1122_s22 + $0x20] sm:$0xff]   ;;  %v1044_v15 = vld [vmem:[%s1122_s22 + $0x28] sm:$0xff]  }
  0x12   : > { %973 = vmatpush3.bf16.msra.mxu0 %v461_v4  ;;  %1007 = vmatpush3.bf16.msra.mxu1 %v461_v4  ;;  %v1041_v12 = vld [vmem:[%s1122_s22 + $0x58] sm:$0xff]   ;;  %v1043_v14 = vld [vmem:[%s1122_s22 + $0x60] sm:$0xff]   ;;  %v1045_v16 = vld [vmem:[%s1122_s22 + $0x68] sm:$0xff]  }
  0x13   : > { %990 = vmatprep.mubr.msk.bf16.mxu1 %vm407_vm2, %v1035_v6  ;;  %v1046_v17 = vld [vmem:[%s1122_s22 + $0x30] sm:$0xff]   ;;  %v1048_v19 = vld [vmem:[%s1122_s22 + $0x38] sm:$0xff]  }
  0x14   : > { %v1047_v18 = vld [vmem:[%s1122_s22 + $0x70] sm:$0xff]   ;;  %v1049_v20 = vld [vmem:[%s1122_s22 + $0x78] sm:$0xff]  }
  0x15   : > { %975 = vmatmul.mubr.msk.bf16.vlgmr.msra.gmra.mxu0 %vm407_vm2, %v1036_v7  ;;  %991 = vmatmul.mubr.msk.bf16.vlgmr.msra.gmra.mxu1 %vm407_vm2, %v1037_v8 }
  0x16   : > { %978 = vmatprep.mubr.msk.bf16.mxu0 %vm407_vm2, %v1038_v9  ;;  %994 = vmatprep.mubr.msk.bf16.mxu1 %vm407_vm2, %v1039_v10 }
  0x1d   : > { %979 = vmatmul.mubr.msk.bf16.gmra.mxu0 %vm407_vm2, %v1040_v11  ;;  %995 = vmatmul.mubr.msk.bf16.gmra.mxu1 %vm407_vm2, %v1041_v12 }
  0x1e   : > { %982 = vmatprep.mubr.msk.bf16.mxu0 %vm407_vm2, %v1042_v13  ;;  %998 = vmatprep.mubr.msk.bf16.mxu1 %vm407_vm2, %v1043_v14 }
  0x25   : > { %983 = vmatmul.mubr.msk.bf16.gmra.mxu0 %vm407_vm2, %v1044_v15  ;;  %999 = vmatmul.mubr.msk.bf16.gmra.mxu1 %vm407_vm2, %v1045_v16 }
  0x26   : > { %986 = vmatprep.mubr.msk.bf16.mxu0 %vm407_vm2, %v1046_v17  ;;  %1002 = vmatprep.mubr.msk.bf16.mxu1 %vm407_vm2, %v1047_v18 }
  0x2d   : > { %987 = vmatmul.mubr.msk.bf16.gmra.mxu0 %vm407_vm2, %v1048_v19  ;;  %1003 = vmatmul.mubr.msk.bf16.gmra.mxu1 %vm407_vm2, %v1049_v20 }
  0xd5   : > { %v976_v22 = vpop.f32.mrf.mxu0  ;;  %v992_v24 = vpop.f32.mrf.mxu1 }
  0xd6   : > { %v732_v23 = vadd.f32 %v976_v22, %v1159_v21  ;;  %v748_v25 = vadd.f32 %v992_v24, %v1159_v21 }
  0xd7   : > { %v497_v26 = vpop.f32.mrf.mxu0  ;;  %v561_v29 = vpop.f32.mrf.mxu1 }
  0xd8   : > { %v764_v27 = vmax.f32 %v732_v23, 0.0  ;;  %v730_v28 = vadd.f32 %v1159_v21, %v497_v26  ;;  %v780_v30 = vmax.f32 %v748_v25, 0.0  ;;  %v746_v31 = vadd.f32 %v1159_v21, %v561_v29 }
  0xd9   : > { %v977_v32 = vpop.f32.mrf.mxu0  ;;  %v993_v35 = vpop.f32.mrf.mxu1 }
  0xda   : > { %796 = vst [vmem:[%s1166_s28 + $0x10] sm:$0xff] %v764_v27  ;;  %v762_v33 = vmax.f32 %v730_v28, 0.0  ;;  %v733_v34 = vadd.f32 %v977_v32, %v1159_v21  ;;  %812 = vst [vmem:[%s1166_s28 + $0x90] sm:$0xff] %v780_v30  ;;  %v778_v36 = vmax.f32 %v746_v31, 0.0  ;;  %v749_v37 = vadd.f32 %v993_v35, %v1159_v21 }
  0xdb   : > { %v500_v38 = vpop.f32.mrf.mxu0  ;;  %v564_v41 = vpop.f32.mrf.mxu1 }
  0xdc   : > { %794 = vst [vmem:[%s1166_s28] sm:$0xff] %v762_v33  ;;  %v765_v39 = vmax.f32 %v733_v34, 0.0  ;;  %v731_v40 = vadd.f32 %v1159_v21, %v500_v38  ;;  %810 = vst [vmem:[%s1166_s28 + $0x80] sm:$0xff] %v778_v36  ;;  %v781_v42 = vmax.f32 %v749_v37, 0.0  ;;  %v747_v43 = vadd.f32 %v1159_v21, %v564_v41 }
  0xdd   : > { %v980_v44 = vpop.f32.mrf.mxu0  ;;  %v996_v47 = vpop.f32.mrf.mxu1 }
  0xde   : > { %797 = vst [vmem:[%s1166_s28 + $0x18] sm:$0xff] %v765_v39  ;;  %v763_v45 = vmax.f32 %v731_v40, 0.0  ;;  %v736_v46 = vadd.f32 %v980_v44, %v1159_v21  ;;  %813 = vst [vmem:[%s1166_s28 + $0x98] sm:$0xff] %v781_v42  ;;  %v779_v48 = vmax.f32 %v747_v43, 0.0  ;;  %v752_v49 = vadd.f32 %v996_v47, %v1159_v21 }
  0xdf   : > { %v513_v50 = vpop.f32.mrf.mxu0  ;;  %v577_v53 = vpop.f32.mrf.mxu1 }
  0xe0   : > { %795 = vst [vmem:[%s1166_s28 + $0x8] sm:$0xff] %v763_v45  ;;  %v768_v51 = vmax.f32 %v736_v46, 0.0  ;;  %v734_v52 = vadd.f32 %v1159_v21, %v513_v50  ;;  %811 = vst [vmem:[%s1166_s28 + $0x88] sm:$0xff] %v779_v48  ;;  %v784_v54 = vmax.f32 %v752_v49, 0.0  ;;  %v750_v55 = vadd.f32 %v1159_v21, %v577_v53 }
  0xe1   : > { %v981_v56 = vpop.f32.mrf.mxu0  ;;  %v997_v59 = vpop.f32.mrf.mxu1 }
  0xe2   : > { %800 = vst [vmem:[%s1166_s28 + $0x30] sm:$0xff] %v768_v51  ;;  %v766_v57 = vmax.f32 %v734_v52, 0.0  ;;  %v737_v58 = vadd.f32 %v981_v56, %v1159_v21  ;;  %816 = vst [vmem:[%s1166_s28 + $0xb0] sm:$0xff] %v784_v54  ;;  %v782_v60 = vmax.f32 %v750_v55, 0.0  ;;  %v753_v61 = vadd.f32 %v997_v59, %v1159_v21 }
  0xe3   : > { %v516_v62 = vpop.f32.mrf.mxu0  ;;  %v580_v1 = vpop.f32.mrf.mxu1 }
  0xe4   : > { %798 = vst [vmem:[%s1166_s28 + $0x20] sm:$0xff] %v766_v57  ;;  %v769_v63 = vmax.f32 %v737_v58, 0.0  ;;  %v735_v0 = vadd.f32 %v1159_v21, %v516_v62  ;;  %814 = vst [vmem:[%s1166_s28 + $0xa0] sm:$0xff] %v782_v60  ;;  %v785_v2 = vmax.f32 %v753_v61, 0.0  ;;  %v751_v3 = vadd.f32 %v1159_v21, %v580_v1 }
  0xe5   : > { %v984_v4 = vpop.f32.mrf.mxu0  ;;  %v1000_v7 = vpop.f32.mrf.mxu1 }
  0xe6   : > { %801 = vst [vmem:[%s1166_s28 + $0x38] sm:$0xff] %v769_v63  ;;  %v767_v5 = vmax.f32 %v735_v0, 0.0  ;;  %v740_v6 = vadd.f32 %v984_v4, %v1159_v21  ;;  %817 = vst [vmem:[%s1166_s28 + $0xb8] sm:$0xff] %v785_v2  ;;  %v783_v8 = vmax.f32 %v751_v3, 0.0  ;;  %v756_v9 = vadd.f32 %v1000_v7, %v1159_v21 }
  0xe7   : > { %v529_v10 = vpop.f32.mrf.mxu0  ;;  %v593_v13 = vpop.f32.mrf.mxu1 }
  0xe8   : > { %799 = vst [vmem:[%s1166_s28 + $0x28] sm:$0xff] %v767_v5  ;;  %v772_v11 = vmax.f32 %v740_v6, 0.0  ;;  %v738_v12 = vadd.f32 %v1159_v21, %v529_v10  ;;  %815 = vst [vmem:[%s1166_s28 + $0xa8] sm:$0xff] %v783_v8  ;;  %v788_v14 = vmax.f32 %v756_v9, 0.0  ;;  %v754_v15 = vadd.f32 %v1159_v21, %v593_v13 }
  0xe9   : > { %v985_v16 = vpop.f32.mrf.mxu0  ;;  %v1001_v19 = vpop.f32.mrf.mxu1 }
  0xea   : > { %804 = vst [vmem:[%s1166_s28 + $0x50] sm:$0xff] %v772_v11  ;;  %v770_v17 = vmax.f32 %v738_v12, 0.0  ;;  %v741_v18 = vadd.f32 %v985_v16, %v1159_v21  ;;  %820 = vst [vmem:[%s1166_s28 + $0xd0] sm:$0xff] %v788_v14  ;;  %v786_v20 = vmax.f32 %v754_v15, 0.0  ;;  %v757_v22 = vadd.f32 %v1001_v19, %v1159_v21 }
  0xeb   : > { %v532_v23 = vpop.f32.mrf.mxu0  ;;  %v596_v26 = vpop.f32.mrf.mxu1 }
  0xec   : > { %802 = vst [vmem:[%s1166_s28 + $0x40] sm:$0xff] %v770_v17  ;;  %v773_v24 = vmax.f32 %v741_v18, 0.0  ;;  %v739_v25 = vadd.f32 %v1159_v21, %v532_v23  ;;  %818 = vst [vmem:[%s1166_s28 + $0xc0] sm:$0xff] %v786_v20  ;;  %v789_v27 = vmax.f32 %v757_v22, 0.0  ;;  %v755_v28 = vadd.f32 %v1159_v21, %v596_v26 }
  0xed   : > { %v988_v29 = vpop.f32.mrf.mxu0  ;;  %v1004_v32 = vpop.f32.mrf.mxu1 }
  0xee   : > { %805 = vst [vmem:[%s1166_s28 + $0x58] sm:$0xff] %v773_v24  ;;  %v771_v30 = vmax.f32 %v739_v25, 0.0  ;;  %v744_v31 = vadd.f32 %v988_v29, %v1159_v21  ;;  %821 = vst [vmem:[%s1166_s28 + $0xd8] sm:$0xff] %v789_v27  ;;  %v787_v33 = vmax.f32 %v755_v28, 0.0  ;;  %v760_v34 = vadd.f32 %v1004_v32, %v1159_v21 }
  0xef   : > { %v545_v35 = vpop.f32.mrf.mxu0  ;;  %v609_v38 = vpop.f32.mrf.mxu1 }
  0xf0   : > { %803 = vst [vmem:[%s1166_s28 + $0x48] sm:$0xff] %v771_v30  ;;  %v776_v36 = vmax.f32 %v744_v31, 0.0  ;;  %v742_v37 = vadd.f32 %v1159_v21, %v545_v35  ;;  %819 = vst [vmem:[%s1166_s28 + $0xc8] sm:$0xff] %v787_v33  ;;  %v792_v39 = vmax.f32 %v760_v34, 0.0  ;;  %v758_v40 = vadd.f32 %v1159_v21, %v609_v38 }
  0xf1   : > { %v989_v41 = vpop.f32.mrf.mxu0  ;;  %v1005_v44 = vpop.f32.mrf.mxu1 }
  0xf2   : > { %808 = vst [vmem:[%s1166_s28 + $0x70] sm:$0xff] %v776_v36  ;;  %v774_v42 = vmax.f32 %v742_v37, 0.0  ;;  %v745_v43 = vadd.f32 %v989_v41, %v1159_v21  ;;  %824 = vst [vmem:[%s1166_s28 + $0xf0] sm:$0xff] %v792_v39  ;;  %v790_v45 = vmax.f32 %v758_v40, 0.0  ;;  %v761_v46 = vadd.f32 %v1005_v44, %v1159_v21 }
  0xf3   : > { %v548_v47 = vpop.f32.mrf.mxu0  ;;  %v612_v50 = vpop.f32.mrf.mxu1 }
  0xf4   : > { %806 = vst [vmem:[%s1166_s28 + $0x60] sm:$0xff] %v774_v42  ;;  %v777_v48 = vmax.f32 %v745_v43, 0.0  ;;  %v743_v49 = vadd.f32 %v1159_v21, %v548_v47  ;;  %822 = vst [vmem:[%s1166_s28 + $0xe0] sm:$0xff] %v790_v45  ;;  %v793_v51 = vmax.f32 %v761_v46, 0.0  ;;  %v759_v52 = vadd.f32 %v1159_v21, %v612_v50 }
  0xf6   : > { %809 = vst [vmem:[%s1166_s28 + $0x78] sm:$0xff] %v777_v48  ;;  %v775_v53 = vmax.f32 %v743_v49, 0.0  ;;  %825 = vst [vmem:[%s1166_s28 + $0xf8] sm:$0xff] %v793_v51  ;;  %v791_v54 = vmax.f32 %v759_v52, 0.0 }
  0xf8   : > { %807 = vst [vmem:[%s1166_s28 + $0x68] sm:$0xff] %v775_v53  ;;  %823 = vst [vmem:[%s1166_s28 + $0xe8] sm:$0xff] %v791_v54 }
  0xf9 PF: > { %s13_s14 = sadd.s32 1, %s1072_s14   ;;  %s1244_s12 = smov %s1068_s13 }
  0xfa   : > { %p10_p5 = scmp.ge.s32.totalorder %s13_s14, 6   ;;  %s1245_s13 = smov %s1247_s15 }
  0xfc   :  { %12 = sbr.rel (!%p10_p5) target bundleno = 2 (0x2), region = 73 }

// kernel: model_forward.5
= control target key start
LH: loop header
LB: loop body
LE: loop exit
PB: predicated region body
PF: predicated region fallthrough
CT: control target
= control target key end

     0   :  { %v881_v0 = vmov 0   ;;  %vm331_vm0 = vcmask 130048   ;;  %s1174_s1 = inlined_call_operand.vmem [shape: bf16[144,128], index: 1, kind: input, shape index: {}]   ;;  %s1175_s0 = inlined_call_operand.vmem [shape: bf16[256,144], index: 0, kind: input, shape index: {}]   ;;  %s1176_s2 = inlined_call_operand.vmem [shape: f32[1,128], index: 2, kind: input, shape index: {}]   ;;  %s1177_s3 = inlined_call_operand.vmem [shape: f32[256,128], index: 3, kind: output, shape index: {}]  }
   0x1   :  { %380 = vmatprep.subr.bf16.mxu0 %v881_v0  ;;  %805 = vmatprep.subr.bf16.mxu1 %v881_v0  ;;  %v824_v1 = vld [vmem:[%s1174_s1 + $0x38] sm:$0xff]   ;;  %v825_v2 = vld [vmem:[%s1174_s1 + $0x30] sm:$0xff]   ;;  %v826_v3 = vld [vmem:[%s1174_s1 + $0x28] sm:$0xff]  }
   0x2   :  { %381 = vmatpush1.bf16.msra.mxu0 %v824_v1  ;;  %814 = vmatpush1.bf16.msra.mxu1 %v824_v1  ;;  %v827_v4 = vld [vmem:[%s1174_s1 + $0x20] sm:$0xff]   ;;  %v828_v7 = vld [vmem:[%s1174_s1 + $0x18] sm:$0xff]   ;;  %v829_v8 = vld [vmem:[%s1174_s1 + $0x10] sm:$0xff]  }
   0x3   :  { %382 = vmatprep.subr.bf16.mxu0 %v881_v0  ;;  %806 = vmatprep.subr.bf16.mxu1 %v881_v0  ;;  %v835_v5 = vld [vmem:[%s1175_s0 + $0x4] ss:$8 sps:$4 sm:$0xff]   ;;  %v833_v12 = vld [vmem:[%s1175_s0] ss:$8 sps:$4 sm:$0xff]   ;;  %v839_v14 = vld [vmem:[%s1175_s0 + $0x14] ss:$8 sps:$4 sm:$0xff]  }
   0x4   :  { %v838_v6 = vld [vmem:[%s1175_s0 + $0x84] ss:$8 sps:$4 sm:$0xff]   ;;  %788 = vmatprep.mubr.msk.bf16.mxu0 %vm331_vm0, %v835_v5  ;;  %v836_v13 = vld [vmem:[%s1175_s0 + $0x80] ss:$8 sps:$4 sm:$0xff]   ;;  %v841_v15 = vld [vmem:[%s1175_s0 + $0x94] ss:$8 sps:$4 sm:$0xff]  }
   0x5   :  { %796 = vmatprep.mubr.msk.bf16.mxu1 %vm331_vm0, %v838_v6  ;;  %v830_v9 = vld [vmem:[%s1174_s1 + $0x8] sm:$0xff]   ;;  %v831_v10 = vld [vmem:[%s1174_s1] sm:$0xff]   ;;  %v843_v16 = vld [vmem:[%s1175_s0 + $0x10] ss:$8 sps:$4 sm:$0xff]  }
   0x6   :  { %383 = vmatpush1.bf16.msra.mxu0 %v825_v2  ;;  %815 = vmatpush1.bf16.msra.mxu1 %v825_v2  ;;  %v832_v11 = vld [vmem:[%s1174_s1 + $0x40] sm:$0xff]   ;;  %v844_v17 = vld [vmem:[%s1175_s0 + $0x90] ss:$8 sps:$4 sm:$0xff]   ;;  %v851_v22 = vld [vmem:[%s1175_s0 + $0x34] ss:$8 sps:$4 sm:$0xff]  }
   0x7   :  { %384 = vmatprep.subr.bf16.mxu0 %v881_v0  ;;  %807 = vmatprep.subr.bf16.mxu1 %v881_v0  ;;  %v845_v18 = vld [vmem:[%s1175_s0 + $0x24] ss:$8 sps:$4 sm:$0xff]   ;;  %v849_v20 = vld [vmem:[%s1175_s0 + $0x20] ss:$8 sps:$4 sm:$0xff]   ;;  %v853_v23 = vld [vmem:[%s1175_s0 + $0xb4] ss:$8 sps:$4 sm:$0xff]  }
   0x8   :  { %v847_v19 = vld [vmem:[%s1175_s0 + $0xa4] ss:$8 sps:$4 sm:$0xff]   ;;  %v850_v21 = vld [vmem:[%s1175_s0 + $0xa0] ss:$8 sps:$4 sm:$0xff]   ;;  %v855_v24 = vld [vmem:[%s1175_s0 + $0x30] ss:$8 sps:$4 sm:$0xff]  }
   0x9   :  { %v856_v25 = vld [vmem:[%s1175_s0 + $0xb0] ss:$8 sps:$4 sm:$0xff]   ;;  %v857_v26 = vld [vmem:[%s1175_s0 + $0x44] ss:$8 sps:$4 sm:$0xff]   ;;  %v861_v28 = vld [vmem:[%s1175_s0 + $0x40] ss:$8 sps:$4 sm:$0xff]  }
   0xa   :  { %385 = vmatpush1.bf16.msra.mxu0 %v826_v3  ;;  %816 = vmatpush1.bf16.msra.mxu1 %v826_v3  ;;  %v859_v27 = vld [vmem:[%s1175_s0 + $0xc4] ss:$8 sps:$4 sm:$0xff]   ;;  %v862_v29 = vld [vmem:[%s1175_s0 + $0xc0] ss:$8 sps:$4 sm:$0xff]   ;;  %v863_v30 = vld [vmem:[%s1175_s0 + $0x54] ss:$8 sps:$4 sm:$0xff]  }
   0xb   :  { %386 = vmatprep.subr.bf16.mxu0 %v881_v0  ;;  %808 = vmatprep.subr.bf16.mxu1 %v881_v0  ;;  %v865_v31 = vld [vmem:[%s1175_s0 + $0xd4] ss:$8 sps:$4 sm:$0xff]   ;;  %v867_v32 = vld [vmem:[%s1175_s0 + $0x50] ss:$8 sps:$4 sm:$0xff]   ;;  %v869_v34 = vld [vmem:[%s1175_s0 + $0x64] ss:$8 sps:$4 sm:$0xff]  }
   0xc   :  { %v868_v33 = vld [vmem:[%s1175_s0 + $0xd0] ss:$8 sps:$4 sm:$0xff]   ;;  %v871_v35 = vld [vmem:[%s1175_s0 + $0xe4] ss:$8 sps:$4 sm:$0xff]   ;;  %v873_v36 = vld [vmem:[%s1175_s0 + $0x60] ss:$8 sps:$4 sm:$0xff]  }
   0xd   :  { %v874_v37 = vld [vmem:[%s1175_s0 + $0xe0] ss:$8 sps:$4 sm:$0xff]   ;;  %v875_v38 = vld [vmem:[%s1175_s0 + $0x74] ss:$8 sps:$4 sm:$0xff]   ;;  %v879_v40 = vld [vmem:[%s1175_s0 + $0x70] ss:$8 sps:$4 sm:$0xff]  }
   0xe   :  { %387 = vmatpush1.bf16.msra.mxu0 %v827_v4  ;;  %817 = vmatpush1.bf16.msra.mxu1 %v827_v4  ;;  %v877_v39 = vld [vmem:[%s1175_s0 + $0xf4] ss:$8 sps:$4 sm:$0xff]   ;;  %v880_v41 = vld [vmem:[%s1175_s0 + $0xf0] ss:$8 sps:$4 sm:$0xff]   ;;  %v1044_v42 = vld [vmem:[%s1176_s2] ss:$0 sm:$0xff] }
   0xf   :  { %388 = vmatprep.subr.bf16.mxu0 %v881_v0  ;;  %809 = vmatprep.subr.bf16.mxu1 %v881_v0 }
  0x12   :  { %389 = vmatpush1.bf16.msra.mxu0 %v828_v7  ;;  %818 = vmatpush1.bf16.msra.mxu1 %v828_v7 }
  0x13   :  { %390 = vmatprep.subr.bf16.mxu0 %v881_v0  ;;  %810 = vmatprep.subr.bf16.mxu1 %v881_v0 }
  0x16   :  { %391 = vmatpush1.bf16.msra.mxu0 %v829_v8  ;;  %819 = vmatpush1.bf16.msra.mxu1 %v829_v8 }
  0x17   :  { %392 = vmatprep.subr.bf16.mxu0 %v881_v0  ;;  %811 = vmatprep.subr.bf16.mxu1 %v881_v0 }
  0x1a   :  { %393 = vmatpush1.bf16.msra.mxu0 %v830_v9  ;;  %820 = vmatpush1.bf16.msra.mxu1 %v830_v9 }
  0x1b   :  { %394 = vmatprep.subr.bf16.mxu0 %v881_v0  ;;  %812 = vmatprep.subr.bf16.mxu1 %v881_v0 }
  0x1e   :  { %395 = vmatpush1.bf16.msra.mxu0 %v831_v10  ;;  %821 = vmatpush1.bf16.msra.mxu1 %v831_v10 }
  0x1f   :  { %410 = vmatprep.subr.bf16.mxu0 %v881_v0  ;;  %813 = vmatprep.subr.bf16.mxu1 %v881_v0 }
  0x22   :  { %411 = vmatpush2.bf16.msra.mxu0 %v832_v11  ;;  %822 = vmatpush2.bf16.msra.mxu1 %v832_v11 }
  0x25   :  { %413 = vmatmul.mubr.bf16.vlgmr.msra.gmra.mxu0 %v833_v12  ;;  %477 = vmatmul.mubr.bf16.vlgmr.msra.gmra.mxu1 %v836_v13 }
  0x26   :  { %789 = vmatprep.mubr.msk.bf16.mxu0 %vm331_vm0, %v839_v14  ;;  %797 = vmatprep.mubr.msk.bf16.mxu1 %vm331_vm0, %v841_v15 }
  0x2d   :  { %421 = vmatmul.mubr.bf16.gmra.mxu0 %v843_v16  ;;  %485 = vmatmul.mubr.bf16.gmra.mxu1 %v844_v17 }
  0x2e   :  { %790 = vmatprep.mubr.msk.bf16.mxu0 %vm331_vm0, %v845_v18  ;;  %798 = vmatprep.mubr.msk.bf16.mxu1 %vm331_vm0, %v847_v19 }
  0x35   :  { %429 = vmatmul.mubr.bf16.gmra.mxu0 %v849_v20  ;;  %493 = vmatmul.mubr.bf16.gmra.mxu1 %v850_v21 }
  0x36   :  { %791 = vmatprep.mubr.msk.bf16.mxu0 %vm331_vm0, %v851_v22  ;;  %799 = vmatprep.mubr.msk.bf16.mxu1 %vm331_vm0, %v853_v23 }
  0x3d   :  { %437 = vmatmul.mubr.bf16.gmra.mxu0 %v855_v24  ;;  %501 = vmatmul.mubr.bf16.gmra.mxu1 %v856_v25 }
  0x3e   :  { %792 = vmatprep.mubr.msk.bf16.mxu0 %vm331_vm0, %v857_v26  ;;  %800 = vmatprep.mubr.msk.bf16.mxu1 %vm331_vm0, %v859_v27 }
  0x45   :  { %445 = vmatmul.mubr.bf16.gmra.mxu0 %v861_v28  ;;  %509 = vmatmul.mubr.bf16.gmra.mxu1 %v862_v29 }
  0x46   :  { %793 = vmatprep.mubr.msk.bf16.mxu0 %vm331_vm0, %v863_v30  ;;  %801 = vmatprep.mubr.msk.bf16.mxu1 %vm331_vm0, %v865_v31 }
  0x4d   :  { %453 = vmatmul.mubr.bf16.gmra.mxu0 %v867_v32  ;;  %517 = vmatmul.mubr.bf16.gmra.mxu1 %v868_v33 }
  0x4e   :  { %794 = vmatprep.mubr.msk.bf16.mxu0 %vm331_vm0, %v869_v34  ;;  %802 = vmatprep.mubr.msk.bf16.mxu1 %vm331_vm0, %v871_v35 }
  0x55   :  { %461 = vmatmul.mubr.bf16.gmra.mxu0 %v873_v36  ;;  %525 = vmatmul.mubr.bf16.gmra.mxu1 %v874_v37 }
  0x56   :  { %795 = vmatprep.mubr.msk.bf16.mxu0 %vm331_vm0, %v875_v38  ;;  %803 = vmatprep.mubr.msk.bf16.mxu1 %vm331_vm0, %v877_v39 }
  0x5d   :  { %469 = vmatmul.mubr.bf16.gmra.mxu0 %v879_v40  ;;  %533 = vmatmul.mubr.bf16.gmra.mxu1 %v880_v41 }
  0xe5   :  { %v414_v43 = vpop.f32.mrf.mxu0  ;;  %v478_v44 = vpop.f32.mrf.mxu1 }
  0xe6   :  { %v647_v45 = vadd.f32 %v1044_v42, %v414_v43  ;;  %v663_v46 = vadd.f32 %v1044_v42, %v478_v44 }
  0xe7   :  { %v416_v47 = vpop.f32.mrf.mxu0  ;;  %v480_v48 = vpop.f32.mrf.mxu1 }
  0xe8   :  { %v679_v49 = vmax.f32 %v647_v45, 0.0  ;;  %v695_v50 = vmax.f32 %v663_v46, 0.0 }
  0xe9   :  { %v417_v51 = vpop.f32.mrf.mxu0  ;;  %v481_v52 = vpop.f32.mrf.mxu1 }
  0xea   :  { %711 = vst [vmem:[%s1177_s3] sm:$0xff] %v679_v49  ;;  %727 = vst [vmem:[%s1177_s3 + $0x80] sm:$0xff] %v695_v50  ;;  %v648_v53 = vadd.f32 %v1044_v42, %v417_v51  ;;  %v664_v54 = vadd.f32 %v1044_v42, %v481_v52 }
  0xeb   :  { %v419_v55 = vpop.f32.mrf.mxu0  ;;  %v483_v56 = vpop.f32.mrf.mxu1 }
  0xec   :  { %v680_v57 = vmax.f32 %v648_v53, 0.0  ;;  %v696_v58 = vmax.f32 %v664_v54, 0.0 }
  0xed   :  { %v422_v59 = vpop.f32.mrf.mxu0  ;;  %v486_v60 = vpop.f32.mrf.mxu1 }
  0xee   :  { %712 = vst [vmem:[%s1177_s3 + $0x8] sm:$0xff] %v680_v57  ;;  %728 = vst [vmem:[%s1177_s3 + $0x88] sm:$0xff] %v696_v58  ;;  %v649_v61 = vadd.f32 %v1044_v42, %v422_v59  ;;  %v665_v62 = vadd.f32 %v1044_v42, %v486_v60 }
  0xef   :  { %v424_v63 = vpop.f32.mrf.mxu0  ;;  %v488_v0 = vpop.f32.mrf.mxu1 }
  0xf0   :  { %v681_v1 = vmax.f32 %v649_v61, 0.0  ;;  %v697_v2 = vmax.f32 %v665_v62, 0.0 }
  0xf1   :  { %v425_v3 = vpop.f32.mrf.mxu0  ;;  %v489_v4 = vpop.f32.mrf.mxu1 }
  0xf2   :  { %713 = vst [vmem:[%s1177_s3 + $0x10] sm:$0xff] %v681_v1  ;;  %729 = vst [vmem:[%s1177_s3 + $0x90] sm:$0xff] %v697_v2  ;;  %v650_v5 = vadd.f32 %v1044_v42, %v425_v3  ;;  %v666_v6 = vadd.f32 %v1044_v42, %v489_v4 }
  0xf3   :  { %v427_v7 = vpop.f32.mrf.mxu0  ;;  %v491_v8 = vpop.f32.mrf.mxu1 }
  0xf4   :  { %v682_v9 = vmax.f32 %v650_v5, 0.0  ;;  %v698_v10 = vmax.f32 %v666_v6, 0.0 }
  0xf5   :  { %v430_v11 = vpop.f32.mrf.mxu0  ;;  %v494_v12 = vpop.f32.mrf.mxu1 }
  0xf6   :  { %714 = vst [vmem:[%s1177_s3 + $0x18] sm:$0xff] %v682_v9  ;;  %730 = vst [vmem:[%s1177_s3 + $0x98] sm:$0xff] %v698_v10  ;;  %v651_v13 = vadd.f32 %v1044_v42, %v430_v11  ;;  %v667_v14 = vadd.f32 %v1044_v42, %v494_v12 }
  0xf7   :  { %v432_v15 = vpop.f32.mrf.mxu0  ;;  %v496_v16 = vpop.f32.mrf.mxu1 }
  0xf8   :  { %v683_v17 = vmax.f32 %v651_v13, 0.0  ;;  %v699_v18 = vmax.f32 %v667_v14, 0.0 }
  0xf9   :  { %v433_v19 = vpop.f32.mrf.mxu0  ;;  %v497_v20 = vpop.f32.mrf.mxu1 }
  0xfa   :  { %715 = vst [vmem:[%s1177_s3 + $0x20] sm:$0xff] %v683_v17  ;;  %731 = vst [vmem:[%s1177_s3 + $0xa0] sm:$0xff] %v699_v18  ;;  %v652_v21 = vadd.f32 %v1044_v42, %v433_v19  ;;  %v668_v22 = vadd.f32 %v1044_v42, %v497_v20 }
  0xfb   :  { %v435_v23 = vpop.f32.mrf.mxu0  ;;  %v499_v24 = vpop.f32.mrf.mxu1 }
  0xfc   :  { %v684_v25 = vmax.f32 %v652_v21, 0.0  ;;  %v700_v26 = vmax.f32 %v668_v22, 0.0 }
  0xfd   :  { %v438_v27 = vpop.f32.mrf.mxu0  ;;  %v502_v28 = vpop.f32.mrf.mxu1 }
  0xfe   :  { %716 = vst [vmem:[%s1177_s3 + $0x28] sm:$0xff] %v684_v25  ;;  %732 = vst [vmem:[%s1177_s3 + $0xa8] sm:$0xff] %v700_v26  ;;  %v653_v29 = vadd.f32 %v1044_v42, %v438_v27  ;;  %v669_v30 = vadd.f32 %v1044_v42, %v502_v28 }
  0xff   :  { %v440_v31 = vpop.f32.mrf.mxu0  ;;  %v504_v32 = vpop.f32.mrf.mxu1 }
 0x100   :  { %v685_v33 = vmax.f32 %v653_v29, 0.0  ;;  %v701_v34 = vmax.f32 %v669_v30, 0.0 }
 0x101   :  { %v441_v35 = vpop.f32.mrf.mxu0  ;;  %v505_v36 = vpop.f32.mrf.mxu1 }
 0x102   :  { %717 = vst [vmem:[%s1177_s3 + $0x30] sm:$0xff] %v685_v33  ;;  %733 = vst [vmem:[%s1177_s3 + $0xb0] sm:$0xff] %v701_v34  ;;  %v654_v37 = vadd.f32 %v1044_v42, %v441_v35  ;;  %v670_v38 = vadd.f32 %v1044_v42, %v505_v36 }
 0x103   :  { %v443_v39 = vpop.f32.mrf.mxu0  ;;  %v507_v40 = vpop.f32.mrf.mxu1 }
 0x104   :  { %v686_v41 = vmax.f32 %v654_v37, 0.0  ;;  %v702_v43 = vmax.f32 %v670_v38, 0.0 }
 0x105   :  { %v446_v44 = vpop.f32.mrf.mxu0  ;;  %v510_v45 = vpop.f32.mrf.mxu1 }
 0x106   :  { %718 = vst [vmem:[%s1177_s3 + $0x38] sm:$0xff] %v686_v41  ;;  %734 = vst [vmem:[%s1177_s3 + $0xb8] sm:$0xff] %v702_v43  ;;  %v655_v46 = vadd.f32 %v1044_v42, %v446_v44  ;;  %v671_v47 = vadd.f32 %v1044_v42, %v510_v45 }
 0x107   :  { %v448_v48 = vpop.f32.mrf.mxu0  ;;  %v512_v49 = vpop.f32.mrf.mxu1 }
 0x108   :  { %v687_v50 = vmax.f32 %v655_v46, 0.0  ;;  %v703_v51 = vmax.f32 %v671_v47, 0.0 }
 0x109   :  { %v449_v52 = vpop.f32.mrf.mxu0  ;;  %v513_v53 = vpop.f32.mrf.mxu1 }
 0x10a   :  { %719 = vst [vmem:[%s1177_s3 + $0x40] sm:$0xff] %v687_v50  ;;  %735 = vst [vmem:[%s1177_s3 + $0xc0] sm:$0xff] %v703_v51  ;;  %v656_v54 = vadd.f32 %v1044_v42, %v449_v52  ;;  %v672_v55 = vadd.f32 %v1044_v42, %v513_v53 }
 0x10b   :  { %v451_v56 = vpop.f32.mrf.mxu0  ;;  %v515_v57 = vpop.f32.mrf.mxu1 }
 0x10c   :  { %v688_v58 = vmax.f32 %v656_v54, 0.0  ;;  %v704_v59 = vmax.f32 %v672_v55, 0.0 }
 0x10d   :  { %v454_v60 = vpop.f32.mrf.mxu0  ;;  %v518_v61 = vpop.f32.mrf.mxu1 }
 0x10e   :  { %720 = vst [vmem:[%s1177_s3 + $0x48] sm:$0xff] %v688_v58  ;;  %736 = vst [vmem:[%s1177_s3 + $0xc8] sm:$0xff] %v704_v59  ;;  %v657_v62 = vadd.f32 %v1044_v42, %v454_v60  ;;  %v673_v63 = vadd.f32 %v1044_v42, %v518_v61 }
 0x10f   :  { %v456_v0 = vpop.f32.mrf.mxu0  ;;  %v520_v1 = vpop.f32.mrf.mxu1 }
 0x110   :  { %v689_v2 = vmax.f32 %v657_v62, 0.0  ;;  %v705_v3 = vmax.f32 %v673_v63, 0.0 }
 0x111   :  { %v457_v4 = vpop.f32.mrf.mxu0  ;;  %v521_v5 = vpop.f32.mrf.mxu1 }
 0x112   :  { %721 = vst [vmem:[%s1177_s3 + $0x50] sm:$0xff] %v689_v2  ;;  %737 = vst [vmem:[%s1177_s3 + $0xd0] sm:$0xff] %v705_v3  ;;  %v658_v6 = vadd.f32 %v1044_v42, %v457_v4  ;;  %v674_v7 = vadd.f32 %v1044_v42, %v521_v5 }
 0x113   :  { %v459_v8 = vpop.f32.mrf.mxu0  ;;  %v523_v9 = vpop.f32.mrf.mxu1 }
 0x114   :  { %v690_v10 = vmax.f32 %v658_v6, 0.0  ;;  %v706_v11 = vmax.f32 %v674_v7, 0.0 }
 0x115   :  { %v462_v12 = vpop.f32.mrf.mxu0  ;;  %v526_v13 = vpop.f32.mrf.mxu1 }
 0x116   :  { %722 = vst [vmem:[%s1177_s3 + $0x58] sm:$0xff] %v690_v10  ;;  %738 = vst [vmem:[%s1177_s3 + $0xd8] sm:$0xff] %v706_v11  ;;  %v659_v14 = vadd.f32 %v1044_v42, %v462_v12  ;;  %v675_v15 = vadd.f32 %v1044_v42, %v526_v13 }
 0x117   :  { %v464_v16 = vpop.f32.mrf.mxu0  ;;  %v528_v17 = vpop.f32.mrf.mxu1 }
 0x118   :  { %v691_v18 = vmax.f32 %v659_v14, 0.0  ;;  %v707_v19 = vmax.f32 %v675_v15, 0.0 }
 0x119   :  { %v465_v20 = vpop.f32.mrf.mxu0  ;;  %v529_v21 = vpop.f32.mrf.mxu1 }
 0x11a   :  { %723 = vst [vmem:[%s1177_s3 + $0x60] sm:$0xff] %v691_v18  ;;  %739 = vst [vmem:[%s1177_s3 + $0xe0] sm:$0xff] %v707_v19  ;;  %v660_v22 = vadd.f32 %v1044_v42, %v465_v20  ;;  %v676_v23 = vadd.f32 %v1044_v42, %v529_v21 }
 0x11b   :  { %v467_v24 = vpop.f32.mrf.mxu0  ;;  %v531_v25 = vpop.f32.mrf.mxu1 }
 0x11c   :  { %v692_v26 = vmax.f32 %v660_v22, 0.0  ;;  %v708_v27 = vmax.f32 %v676_v23, 0.0 }
 0x11d   :  { %v470_v28 = vpop.f32.mrf.mxu0  ;;  %v534_v29 = vpop.f32.mrf.mxu1 }
 0x11e   :  { %724 = vst [vmem:[%s1177_s3 + $0x68] sm:$0xff] %v692_v26  ;;  %740 = vst [vmem:[%s1177_s3 + $0xe8] sm:$0xff] %v708_v27  ;;  %v661_v30 = vadd.f32 %v1044_v42, %v470_v28  ;;  %v677_v31 = vadd.f32 %v1044_v42, %v534_v29 }
 0x11f   :  { %v472_v32 = vpop.f32.mrf.mxu0  ;;  %v536_v33 = vpop.f32.mrf.mxu1 }
 0x120   :  { %v693_v34 = vmax.f32 %v661_v30, 0.0  ;;  %v709_v35 = vmax.f32 %v677_v31, 0.0 }
 0x121   :  { %v473_v36 = vpop.f32.mrf.mxu0  ;;  %v537_v37 = vpop.f32.mrf.mxu1 }
 0x122   :  { %725 = vst [vmem:[%s1177_s3 + $0x70] sm:$0xff] %v693_v34  ;;  %741 = vst [vmem:[%s1177_s3 + $0xf0] sm:$0xff] %v709_v35  ;;  %v662_v38 = vadd.f32 %v1044_v42, %v473_v36  ;;  %v678_v39 = vadd.f32 %v1044_v42, %v537_v37 }
 0x123   :  { %v475_v40 = vpop.f32.mrf.mxu0  ;;  %v539_v41 = vpop.f32.mrf.mxu1 }
 0x124   :  { %v694_v43 = vmax.f32 %v662_v38, 0.0  ;;  %v710_v44 = vmax.f32 %v678_v39, 0.0 }
 0x126   :  { %726 = vst [vmem:[%s1177_s3 + $0x78] sm:$0xff] %v694_v43  ;;  %742 = vst [vmem:[%s1177_s3 + $0xf8] sm:$0xff] %v710_v44 }

// kernel: model_forward.6
= control target key start
LH: loop header
LB: loop body
LE: loop exit
PB: predicated region body
PF: predicated region fallthrough
CT: control target
= control target key end

     0   :  { %v2026_v1 = vmov 0.0   ;;  %v2027_v2 = vmov 0   ;;  %vm2028_vm0 = vmmov 0   ;;  %vm70_vm1 = vcmask 261120   ;;  %s2030_s17 = smov 64   ;;  %s2031_s18 = smov 96   ;;  %s2454_s1 = inlined_call_operand.vmem [shape: bf16[32,256], index: 1, kind: input, shape index: {}]   ;;  %s2455_s3 = inlined_call_operand.vmem [shape: bf16[32,128], index: 3, kind: input, shape index: {}]   ;;  %s2456_s0 = inlined_call_operand.vmem [shape: bf16[16,32], index: 0, kind: input, shape index: {}]   ;;  %s2457_s4 = inlined_call_operand.vmem [shape: bf16[32,128], index: 4, kind: input, shape index: {}]   ;;  %s2458_s2 = inlined_call_operand.vmem [shape: f32[1,256], index: 2, kind: input, shape index: {}]   ;;  %s2459_s5 = inlined_call_operand.vmem [shape: bf16[64,128], index: 5, kind: input, shape index: {}]   ;;  %s2460_s6 = inlined_call_operand.vmem [shape: f32[1,128], index: 6, kind: input, shape index: {}]   ;;  %s2461_s7 = inlined_call_operand.vmem [shape: f32[16,128], index: 7, kind: output, shape index: {}]  }
   0x1   :  { %v1882_v0 = vld [vmem:[%s2454_s1 + $0x14] ss:$8 sps:$4 sm:$0xff]   ;;  %1736 = vmatprep.subr.bf16.mxu1 %v2026_v1  ;;  %106 = vmatprep.mubr.bf16.mxu0 %v2027_v2  ;;  %v1884_v3 = vld [vmem:[%s2454_s1 + $0x10] ss:$8 sps:$4 sm:$0xff]   ;;  %v1885_v4 = vld [vmem:[%s2454_s1 + $0x4] ss:$8 sps:$4 sm:$0xff]   ;;  %v35_v11 = vlaneseq }
   0x2   :  { %1740 = vmatprep.mubr.msk.bf16.mxu1 %vm2028_vm0, %v2026_v1  ;;  %86 = vmatprep.subr.bf16.mxu0 %v1882_v0  ;;  %v1887_v5 = vld [vmem:[%s2454_s1] ss:$8 sps:$4 sm:$0xff]   ;;  %vm298_vm2 = vcmask 253952   ;;  %vm471_vm3 = vcmask 254977   ;;  %vm307_vm4 = vcmask 519427   ;;  %vm645_vm5 = vcmask 256002  }
   0x3   :  { %87 = vmatpush1.bf16.msra.mxu0 %v1884_v3  ;;  %v2090_v6 = vld [vmem:[%s2455_s3 + $0x8] sm:$0xff]   ;;  %v1889_v7 = vld [vmem:[%s2456_s0] sm:$0xff]   ;;  %v36_v12 = vshrl.u32 %v35_v11, 7  ;;  %vm480_vm6 = vcmask 518402   ;;  %vm816_vm7 = vcmask 257027   ;;  %vm654_vm8 = vcmask 517377  }
   0x4   :  { %88 = vmatprep.subr.bf16.mxu0 %v1885_v4  ;;  %1737 = vmatpush3.bf16.msra.mxu1 %v2090_v6  ;;  %v2100_v8 = vld [vmem:[%s2455_s3] sm:$0xff]   ;;  %v2105_v9 = vld [vmem:[%s2457_s4 + $0x8] sm:$0xff]   ;;  %vm825_vm9 = vcmask 516352   ;;  %vm1553_vm10 = vcmask 523264  }
   0x5   :  { %1738 = vmatprep.subr.bf16.mxu1 %v2026_v1  ;;  %v2115_v10 = vld [vmem:[%s2457_s4] sm:$0xff]   ;;  %v37_v13 = vsub.s32 0, %v36_v12  ;;  %v41_v15 = vsub.s32 1, %v36_v12 }
   0x6   :  { %v33_v14 = vld [vmem:[%s2458_s2] sm:$0x3]  ;;  %s2029_s2 = smov 32  }
   0x7   :  { %89 = vmatpush1.bf16.msra.mxu0 %v1887_v5  ;;  %v38_v16 = vrot.slane %v33_v14, %v37_v13  ;;  %v42_v17 = vrot.slane %v33_v14, %v41_v15 }
   0x8   :  { %1744 = vmatprep.subr.bf16.mxu0 %v2026_v1  ;;  %1739 = vmatpush3.bf16.msra.mxu1 %v2100_v8 }
   0x9   :  { %1752 = vmatprep.subr.bf16.mxu1 %v2026_v1 }
   0xa   :  { %1609 = vmatmul.mubr.msk.bf16.vlgmr.msra.gmra.mxu0 %vm70_vm1, %v1889_v7 }
   0xb   :  { %1745 = vmatpush3.bf16.msra.mxu0 %v2105_v9  ;;  %1748 = vmatprep.mubr.msk.bf16.mxu0 %vm2028_vm0, %v2026_v1 }
   0xc   :  { %1746 = vmatprep.subr.bf16.mxu0 %v2026_v1  ;;  %1741 = vmatmul.mubr.bf16.vlgmr.msra.gmra.mxu1 %v2027_v2 }
   0xd   :  { %1753 = vmatpush3.bf16.msra.mxu1 %v2090_v6  ;;  %1756 = vmatprep.mubr.msk.bf16.mxu1 %vm2028_vm0, %v2026_v1 }
   0xe   :  { %1754 = vmatprep.subr.bf16.mxu1 %v2026_v1 }
   0xf   :  { %1747 = vmatpush3.bf16.msra.mxu0 %v2115_v10 }
  0x10   :  { %1760 = vmatprep.subr.bf16.mxu0 %v2026_v1 }
  0x11   :  { %1755 = vmatpush3.bf16.msra.mxu1 %v2100_v8 }
  0x12   :  { %1749 = vmatmul.mubr.bf16.vlgmr.msra.gmra.mxu0 %v2027_v2  ;;  %1768 = vmatprep.subr.bf16.mxu1 %v2026_v1 }
  0x13   :  { %1761 = vmatpush3.bf16.msra.mxu0 %v2105_v9  ;;  %1764 = vmatprep.mubr.msk.bf16.mxu0 %vm2028_vm0, %v2026_v1 }
  0x14   :  { %1762 = vmatprep.subr.bf16.mxu0 %v2026_v1 }
  0x17   :  { %1763 = vmatpush3.bf16.msra.mxu0 %v2115_v10 }
  0x18   :  { %1776 = vmatprep.subr.bf16.mxu0 %v2026_v1 }
  0xca   :  { %v108_v18 = vpop.f32.mrf.mxu0 }
  0xcb   :  { %v109_v19 = vadd.f32 %v108_v18, %v38_v16 }
  0xcc   :  { %v110_v20 = vpop.f32.mrf.mxu0  ;;  %v179_v21 = vpop.f32.mrf.mxu1 }
  0xcd   :  { %117 = vst [vmem:[#allocation2 + $0x10] sm:$0xff] %v109_v19  ;;  %v111_v22 = vadd.f32 %v110_v20, %v42_v17 }
  0xce   :  { %v112_v23 = vpop.f32.mrf.mxu0  ;;  %v1742_v24 = vpop.f32.mrf.mxu1 }
  0xcf   :  { %118 = vst [vmem:[#allocation2] sm:$0xff] %v111_v22  ;;  %v113_v25 = vadd.f32 %v112_v23, %v38_v16 }
  0xd0   :  { %v114_v26 = vpop.f32.mrf.mxu0  ;;  %v182_v27 = vpop.f32.mrf.mxu1 }
  0xd1   :  { %119 = vst [vmem:[#allocation2 + $0x18] sm:$0xff] %v113_v25  ;;  %v115_v28 = vadd.f32 %v114_v26, %v42_v17 }
  0xd2   :  { %v257_v29 = vpop.f32.mrf.mxu0  ;;  %v1743_v30 = vpop.f32.mrf.mxu1 }
  0xd3   :  { %120 = vst [vmem:[#allocation2 + $0x8] sm:$0xff] %v115_v28  ;;  %v264_v35 = vrot.slane %v257_v29, 2 }
  0xd4   :  { %v129_v31 = vld [vmem:[#allocation2 + $0x10] sm:$0x3]  ;;  %v1750_v32 = vpop.f32.mrf.mxu0  ;;  %v309_v13 = vld [vmem:[#allocation2 + $0x10] sm:$0xc] }
  0xd5   :  { %v185_v33 = vadd.f32 %v179_v21, %v129_v31 }
  0xd6   :  { %v260_v34 = vpop.f32.mrf.mxu0 }
  0xd7   :  { %1898 = vtanh.f32 %v185_v33  ;;  %v1612_v41 = vmul.f32 -1.442695, %v185_v33 }
  0xd8   :  { %v1751_v36 = vpop.f32.mrf.mxu0 }
  0xda   :  { %v210_v37 = vld [vmem:[#allocation2 + $0x8] sm:$0xc0]  ;;  %v386_v20 = vld [vmem:[#allocation2 + $0x8] sm:$0x30] }
  0xdb   :  { %v266_v38 = vadd.f32 %v264_v35, %v210_v37 }
  0xdd   :  { %1900 = vtanh.f32 %v266_v38  ;;  %v1615_v42 = vmul.f32 -1.442695, %v266_v38 }
  0xde   :  { %1902 = vpow2.f32 %v1612_v41 }
  0xdf   :  { %1904 = vpow2.f32 %v1615_v42 }
  0xe4   :  { %v1899_v39 = vpop.eup %1898 }
  0xe5   :  { %195 = vrot.lane.b32.xlu0 %v1899_v39, %s2029_s2 }
  0xea   :  { %v1901_v40 = vpop.eup %1900 }
  0xeb   :  { %276 = vrot.lane.b32.xlu0 %v1901_v40, %s2029_s2  ;;  %v1903_v43 = vpop.eup %1902 }
  0xec   :  { %v189_v44 = vadd.f32 1.0, %v1903_v43  ;;  %v1905_v45 = vpop.eup %1904 }
  0xed   :  { %v270_v46 = vadd.f32 1.0, %v1905_v45 }
  0xee   :  { %1906 = vrcp.f32 %v189_v44 }
  0xef   :  { %1908 = vrcp.f32 %v270_v46 }
  0xfb   :  { %v1907_v47 = vpop.eup %1906 }
  0xfc   :  { %v1909_v50 = vpop.eup %1908  ;;  %v193_v53 = vmul.f32 0.0, %v1907_v47 }
  0xfd   :  { %v274_v56 = vmul.f32 0.0, %v1909_v50 }
 0x157   :  { %v196_v48 = vpop.permute.xlu0 %195 }
 0x158   :  { %v198_v49 = vmul.f32 %v1907_v47, %v196_v48 }
 0x15a   :  { %200 = vrot.lane.b32.xlu1 %v198_v49, %s2029_s2 }
 0x15d   :  { %v277_v51 = vpop.permute.xlu0 %276 }
 0x15e   :  { %v279_v52 = vmul.f32 %v1909_v50, %v277_v51 }
 0x160   :  { %281 = vrot.lane.b32.xlu1 %v279_v52, %s2029_s2 }
 0x1cc   :  { %v201_v54 = vpop.permute.xlu1 %200 }
 0x1cd   :  { %v2141_v55 = vadd.f32 %v201_v54, %v193_v53 }
 0x1cf   :  { %1910 = vtanh.f32 %v2141_v55  ;;  %v367_v39 = vrot.slane %v2141_v55, 6 }
 0x1d2   :  { %v282_v57 = vpop.permute.xlu1 %281 }
 0x1d3   :  { %v2144_v58 = vadd.f32 %v282_v57, %v274_v56 }
 0x1d5   :  { %1912 = vtanh.f32 %v2144_v58  ;;  %v445_v43 = vrot.slane %v2144_v58, 2 }
 0x1dc   :  { %v1911_v59 = vpop.eup %1910 }
 0x1dd   :  { %206 = vrot.lane.b32.xlu0 %v1911_v59, %s2029_s2 }
 0x1e2   :  { %v1913_v60 = vpop.eup %1912 }
 0x1e3   :  { %287 = vrot.lane.b32.xlu1 %v1913_v60, %s2029_s2 }
 0x24f   :  { %v207_v61 = vpop.permute.xlu0 %206 }
 0x250   :  { %v209_v62 = vmul.f32 %v1907_v47, %v207_v61  ;;  %v482_v61 = vld [vmem:[#allocation2 + $0x10] sm:$0x30] }
 0x252   :  { %v2149_v63 = vpack.c.bf16 %v209_v62, %v209_v62 }
 0x254   :  { %310 = vrot.lane.b32.xlu0 %v2149_v63, %s2030_s17 }
 0x255   :  { %v288_v0 = vpop.permute.xlu1 %287 }
 0x256   :  { %v290_v2 = vmul.f32 %v1909_v50, %v288_v0 }
 0x258   :  { %v2153_v3 = vpack.c.bf16 %v290_v2, %v290_v2 }
 0x25a   :  { %v387_v4 = vrot.slane %v2153_v3, 3 }
 0x25c   :  { %388 = vrot.lane.b32.xlu1 %v387_v4, %s2030_s17 }
 0x2c6   :  { %v311_v5 = vpop.permute.xlu0 %310 }
 0x2c7   :  { %1757 = vmatmul.mubr.msk.bf16.vlgmr.msra.gmra.mxu1 %vm70_vm1, %v311_v5 }
 0x2c8   :  { %1769 = vmatpush3.bf16.msra.mxu1 %v2090_v6  ;;  %1772 = vmatprep.mubr.msk.bf16.mxu1 %vm2028_vm0, %v2026_v1 }
 0x2c9   :  { %1770 = vmatprep.subr.bf16.mxu1 %v2026_v1 }
 0x2cc   :  { %1771 = vmatpush3.bf16.msra.mxu1 %v2100_v8 }
 0x2cd   :  { %1784 = vmatprep.subr.bf16.mxu1 %v2026_v1 }
 0x2ce   :  { %v389_v7 = vpop.permute.xlu1 %388 }
 0x2cf   :  { %1765 = vmatmul.mubr.msk.bf16.vlgmr.msra.gmra.mxu0 %vm70_vm1, %v389_v7 }
 0x2d0   :  { %1777 = vmatpush3.bf16.msra.mxu0 %v2105_v9  ;;  %1780 = vmatprep.mubr.msk.bf16.mxu0 %vm2028_vm0, %v2026_v1 }
 0x2d1   :  { %1778 = vmatprep.subr.bf16.mxu0 %v2026_v1 }
 0x2d4   :  { %1779 = vmatpush3.bf16.msra.mxu0 %v2115_v10 }
 0x2d5   :  { %1792 = vmatprep.subr.bf16.mxu0 %v2026_v1 }
 0x387   :  { %v349_v11 = vpop.f32.mrf.mxu1 }
 0x388   :  { %v356_v12 = vrot.slane %v349_v11, 6  ;;  %v560_v11 = vld [vmem:[#allocation2 + $0x8] sm:$0xc] }
 0x389   :  { %v1758_v14 = vpop.f32.mrf.mxu1 }
 0x38a   :  { %v358_v15 = vadd.f32 %v356_v12, %v309_v13 }
 0x38b   :  { %v352_v16 = vpop.f32.mrf.mxu1 }
 0x38c   :  { %1914 = vtanh.f32 %v358_v15  ;;  %v1619_v27 = vmul.f32 -1.442695, %v358_v15 }
 0x38d   :  { %v1759_v17 = vpop.f32.mrf.mxu1 }
 0x38f   :  { %v427_v18 = vpop.f32.mrf.mxu0 }
 0x390   :  { %v434_v19 = vrot.slane %v427_v18, 4 }
 0x391   :  { %v1766_v21 = vpop.f32.mrf.mxu0 }
 0x392   :  { %v436_v22 = vadd.f32 %v434_v19, %v386_v20 }
 0x393   :  { %v430_v23 = vpop.f32.mrf.mxu0 }
 0x394   :  { %1916 = vtanh.f32 %v436_v22  ;;  %v1621_v28 = vmul.f32 -1.442695, %v436_v22 }
 0x395   :  { %v1767_v24 = vpop.f32.mrf.mxu0  ;;  %1918 = vpow2.f32 %v1619_v27 }
 0x396   :  { %1920 = vpow2.f32 %v1621_v28 }
 0x399   :  { %v1915_v25 = vpop.eup %1914 }
 0x39a   :  { %371 = vrot.lane.b32.xlu0 %v1915_v25, %s2029_s2 }
 0x3a1   :  { %v1917_v26 = vpop.eup %1916 }
 0x3a2   :  { %449 = vrot.lane.b32.xlu1 %v1917_v26, %s2029_s2  ;;  %v1919_v29 = vpop.eup %1918 }
 0x3a3   :  { %v362_v30 = vadd.f32 1.0, %v1919_v29  ;;  %v1921_v31 = vpop.eup %1920 }
 0x3a4   :  { %v440_v32 = vadd.f32 1.0, %v1921_v31 }
 0x3a5   :  { %1922 = vrcp.f32 %v362_v30 }
 0x3a6   :  { %1924 = vrcp.f32 %v440_v32 }
 0x3b2   :  { %v1923_v33 = vpop.eup %1922 }
 0x3b3   :  { %v1925_v36 = vpop.eup %1924  ;;  %v369_v40 = vmul.f32 %v1923_v33, %v367_v39 }
 0x3b4   :  { %v447_v44 = vmul.f32 %v1925_v36, %v445_v43 }
 0x40c   :  { %v372_v34 = vpop.permute.xlu0 %371 }
 0x40d   :  { %v374_v35 = vmul.f32 %v1923_v33, %v372_v34 }
 0x40f   :  { %376 = vrot.lane.b32.xlu0 %v374_v35, %s2029_s2 }
 0x414   :  { %v450_v37 = vpop.permute.xlu1 %449 }
 0x415   :  { %v452_v38 = vmul.f32 %v1925_v36, %v450_v37 }
 0x417   :  { %454 = vrot.lane.b32.xlu1 %v452_v38, %s2029_s2 }
 0x481   :  { %v377_v41 = vpop.permute.xlu0 %376 }
 0x482   :  { %v2176_v42 = vadd.f32 %v377_v41, %v369_v40 }
 0x484   :  { %1926 = vtanh.f32 %v2176_v42  ;;  %v541_v30 = vrot.slane %v2176_v42, 6 }
 0x489   :  { %v455_v45 = vpop.permute.xlu1 %454 }
 0x48a   :  { %v2180_v46 = vadd.f32 %v455_v45, %v447_v44 }
 0x48c   :  { %1928 = vtanh.f32 %v2180_v46  ;;  %v619_v34 = vrot.slane %v2180_v46, 2 }
 0x491   :  { %v1927_v47 = vpop.eup %1926 }
 0x492   :  { %382 = vrot.lane.b32.xlu0 %v1927_v47, %s2029_s2 }
 0x499   :  { %v1929_v48 = vpop.eup %1928 }
 0x49a   :  { %460 = vrot.lane.b32.xlu1 %v1929_v48, %s2029_s2 }
 0x504   :  { %v383_v49 = vpop.permute.xlu0 %382 }
 0x505   :  { %v385_v50 = vmul.f32 %v1923_v33, %v383_v49 }
 0x507   :  { %v2185_v51 = vpack.c.bf16 %v385_v50, %v385_v50 }
 0x509   :  { %v483_v52 = vrot.slane %v2185_v51, 1 }
 0x50b   :  { %484 = vrot.lane.b32.xlu0 %v483_v52, %s2030_s17 }
 0x50c   :  { %v461_v53 = vpop.permute.xlu1 %460 }
 0x50d   :  { %v463_v54 = vmul.f32 %v1925_v36, %v461_v53  ;;  %v656_v53 = vld [vmem:[#allocation2 + $0x10] sm:$0xc0] }
 0x50f   :  { %v2189_v55 = vpack.c.bf16 %v463_v54, %v463_v54 }
 0x511   :  { %v561_v56 = vrot.slane %v2189_v55, 2 }
 0x513   :  { %562 = vrot.lane.b32.xlu1 %v561_v56, %s2030_s17 }
 0x57d   :  { %v485_v57 = vpop.permute.xlu0 %484 }
 0x57e   :  { %1773 = vmatmul.mubr.msk.bf16.vlgmr.msra.gmra.mxu1 %vm70_vm1, %v485_v57 }
 0x57f   :  { %1785 = vmatpush3.bf16.msra.mxu1 %v2090_v6  ;;  %1788 = vmatprep.mubr.msk.bf16.mxu1 %vm2028_vm0, %v2026_v1 }
 0x580   :  { %1786 = vmatprep.subr.bf16.mxu1 %v2026_v1 }
 0x583   :  { %1787 = vmatpush3.bf16.msra.mxu1 %v2100_v8 }
 0x584   :  { %1800 = vmatprep.subr.bf16.mxu1 %v2026_v1 }
 0x585   :  { %v563_v58 = vpop.permute.xlu1 %562 }
 0x586   :  { %1781 = vmatmul.mubr.msk.bf16.vlgmr.msra.gmra.mxu0 %vm70_vm1, %v563_v58 }
 0x587   :  { %1793 = vmatpush3.bf16.msra.mxu0 %v2105_v9  ;;  %1796 = vmatprep.mubr.msk.bf16.mxu0 %vm2028_vm0, %v2026_v1 }
 0x588   :  { %1794 = vmatprep.subr.bf16.mxu0 %v2026_v1 }
 0x58b   :  { %1795 = vmatpush3.bf16.msra.mxu0 %v2115_v10 }
 0x58c   :  { %1808 = vmatprep.subr.bf16.mxu0 %v2026_v1 }
 0x63e   :  { %v523_v59 = vpop.f32.mrf.mxu1 }
 0x63f   :  { %v530_v60 = vrot.slane %v523_v59, 4  ;;  %v734_v59 = vld [vmem:[#allocation2 + $0x8] sm:$0x3] }
 0x640   :  { %v1774_v62 = vpop.f32.mrf.mxu1 }
 0x641   :  { %v532_v0 = vadd.f32 %v530_v60, %v482_v61 }
 0x642   :  { %v526_v2 = vpop.f32.mrf.mxu1 }
 0x643   :  { %1930 = vtanh.f32 %v532_v0  ;;  %v1625_v18 = vmul.f32 -1.442695, %v532_v0 }
 0x644   :  { %v1775_v4 = vpop.f32.mrf.mxu1 }
 0x646   :  { %v601_v5 = vpop.f32.mrf.mxu0 }
 0x647   :  { %v608_v7 = vrot.slane %v601_v5, 6 }
 0x648   :  { %v1782_v12 = vpop.f32.mrf.mxu0 }
 0x649   :  { %v610_v13 = vadd.f32 %v608_v7, %v560_v11 }
 0x64a   :  { %v604_v14 = vpop.f32.mrf.mxu0 }
 0x64b   :  { %1932 = vtanh.f32 %v610_v13  ;;  %v1627_v19 = vmul.f32 -1.442695, %v610_v13 }
 0x64c   :  { %v1783_v15 = vpop.f32.mrf.mxu0  ;;  %1934 = vpow2.f32 %v1625_v18 }
 0x64d   :  { %1936 = vpow2.f32 %v1627_v19 }
 0x650   :  { %v1931_v16 = vpop.eup %1930 }
 0x651   :  { %545 = vrot.lane.b32.xlu0 %v1931_v16, %s2029_s2 }
 0x658   :  { %v1933_v17 = vpop.eup %1932 }
 0x659   :  { %623 = vrot.lane.b32.xlu1 %v1933_v17, %s2029_s2  ;;  %v1935_v20 = vpop.eup %1934 }
 0x65a   :  { %v536_v21 = vadd.f32 1.0, %v1935_v20  ;;  %v1937_v22 = vpop.eup %1936 }
 0x65b   :  { %v614_v23 = vadd.f32 1.0, %v1937_v22 }
 0x65c   :  { %1938 = vrcp.f32 %v536_v21 }
 0x65d   :  { %1940 = vrcp.f32 %v614_v23 }
 0x669   :  { %v1939_v24 = vpop.eup %1938 }
 0x66a   :  { %v1941_v27 = vpop.eup %1940  ;;  %v543_v31 = vmul.f32 %v1939_v24, %v541_v30 }
 0x66b   :  { %v621_v35 = vmul.f32 %v1941_v27, %v619_v34 }
 0x6c3   :  { %v546_v25 = vpop.permute.xlu0 %545 }
 0x6c4   :  { %v548_v26 = vmul.f32 %v1939_v24, %v546_v25 }
 0x6c6   :  { %550 = vrot.lane.b32.xlu0 %v548_v26, %s2029_s2 }
 0x6cb   :  { %v624_v28 = vpop.permute.xlu1 %623 }
 0x6cc   :  { %v626_v29 = vmul.f32 %v1941_v27, %v624_v28 }
 0x6ce   :  { %628 = vrot.lane.b32.xlu1 %v626_v29, %s2029_s2 }
 0x738   :  { %v551_v32 = vpop.permute.xlu0 %550 }
 0x739   :  { %v2212_v33 = vadd.f32 %v551_v32, %v543_v31 }
 0x73b   :  { %1942 = vtanh.f32 %v2212_v33  ;;  %v715_v22 = vrot.slane %v2212_v33, 6 }
 0x740   :  { %v629_v36 = vpop.permute.xlu1 %628 }
 0x741   :  { %v2216_v37 = vadd.f32 %v629_v36, %v621_v35 }
 0x743   :  { %1944 = vtanh.f32 %v2216_v37  ;;  %v790_v26 = vrot.slane %v2216_v37, 2 }
 0x748   :  { %v1943_v38 = vpop.eup %1942 }
 0x749   :  { %556 = vrot.lane.b32.xlu0 %v1943_v38, %s2029_s2 }
 0x750   :  { %v1945_v39 = vpop.eup %1944 }
 0x751   :  { %634 = vrot.lane.b32.xlu1 %v1945_v39, %s2029_s2 }
 0x7bb   :  { %v557_v40 = vpop.permute.xlu0 %556 }
 0x7bc   :  { %v559_v41 = vmul.f32 %v1939_v24, %v557_v40 }
 0x7be   :  { %v2221_v42 = vpack.c.bf16 %v559_v41, %v559_v41  ;;  %v827_v41 = vld [vmem:[#allocation2 + $0x18] sm:$0x3] }
 0x7c0   :  { %v657_v43 = vrot.slane %v2221_v42, 2 }
 0x7c2   :  { %658 = vrot.lane.b32.xlu0 %v657_v43, %s2030_s17 }
 0x7c3   :  { %v635_v44 = vpop.permute.xlu1 %634 }
 0x7c4   :  { %v637_v45 = vmul.f32 %v1941_v27, %v635_v44 }
 0x7c6   :  { %v2225_v46 = vpack.c.bf16 %v637_v45, %v637_v45 }
 0x7c8   :  { %v735_v47 = vrot.slane %v2225_v46, 1 }
 0x7ca   :  { %736 = vrot.lane.b32.xlu1 %v735_v47, %s2030_s17 }
 0x834   :  { %v659_v48 = vpop.permute.xlu0 %658 }
 0x835   :  { %1789 = vmatmul.mubr.msk.bf16.vlgmr.msra.gmra.mxu1 %vm70_vm1, %v659_v48 }
 0x836   :  { %1801 = vmatpush3.bf16.msra.mxu1 %v2090_v6  ;;  %1804 = vmatprep.mubr.msk.bf16.mxu1 %vm2028_vm0, %v2026_v1 }
 0x837   :  { %1802 = vmatprep.subr.bf16.mxu1 %v2026_v1 }
 0x83a   :  { %1803 = vmatpush3.bf16.msra.mxu1 %v2100_v8 }
 0x83b   :  { %1816 = vmatprep.subr.bf16.mxu1 %v2026_v1 }
 0x83c   :  { %v737_v49 = vpop.permute.xlu1 %736 }
 0x83d   :  { %1797 = vmatmul.mubr.msk.bf16.vlgmr.msra.gmra.mxu0 %vm70_vm1, %v737_v49 }
 0x83e   :  { %1809 = vmatpush3.bf16.msra.mxu0 %v2105_v9  ;;  %1812 = vmatprep.mubr.msk.bf16.mxu0 %vm2028_vm0, %v2026_v1 }
 0x83f   :  { %1810 = vmatprep.subr.bf16.mxu0 %v2026_v1 }
 0x842   :  { %1811 = vmatpush3.bf16.msra.mxu0 %v2115_v10 }
 0x843   :  { %1824 = vmatprep.subr.bf16.mxu0 %v2026_v1 }
 0x8f5   :  { %v697_v50 = vpop.f32.mrf.mxu1 }
 0x8f6   :  { %v704_v52 = vrot.slane %v697_v50, 2  ;;  %v902_v50 = vld [vmem:[#allocation2] sm:$0xc0] }
 0x8f7   :  { %v1790_v54 = vpop.f32.mrf.mxu1 }
 0x8f8   :  { %v706_v56 = vadd.f32 %v704_v52, %v656_v53 }
 0x8f9   :  { %v700_v57 = vpop.f32.mrf.mxu1 }
 0x8fa   :  { %1946 = vtanh.f32 %v706_v56  ;;  %v1631_v7 = vmul.f32 -1.442695, %v706_v56 }
 0x8fb   :  { %v1791_v58 = vpop.f32.mrf.mxu1 }
 0x8fd   :  { %v775_v60 = vpop.f32.mrf.mxu0 }
 0x8fe   :  { %v781_v61 = vadd.f32 %v775_v60, %v734_v59 }
 0x8ff   :  { %v1798_v62 = vpop.f32.mrf.mxu0 }
 0x900   :  { %1948 = vtanh.f32 %v781_v61  ;;  %v1633_v11 = vmul.f32 -1.442695, %v781_v61 }
 0x901   :  { %v778_v0 = vpop.f32.mrf.mxu0  ;;  %1950 = vpow2.f32 %v1631_v7 }
 0x902   :  { %1952 = vpow2.f32 %v1633_v11 }
 0x903   :  { %v1799_v2 = vpop.f32.mrf.mxu0 }
 0x907   :  { %v1947_v4 = vpop.eup %1946 }
 0x908   :  { %719 = vrot.lane.b32.xlu0 %v1947_v4, %s2029_s2 }
 0x90d   :  { %v1949_v5 = vpop.eup %1948 }
 0x90e   :  { %794 = vrot.lane.b32.xlu1 %v1949_v5, %s2029_s2  ;;  %v1951_v12 = vpop.eup %1950 }
 0x90f   :  { %v710_v13 = vadd.f32 1.0, %v1951_v12  ;;  %v1953_v14 = vpop.eup %1952 }
 0x910   :  { %v785_v15 = vadd.f32 1.0, %v1953_v14 }
 0x911   :  { %1954 = vrcp.f32 %v710_v13 }
 0x912   :  { %1956 = vrcp.f32 %v785_v15 }
 0x91e   :  { %v1955_v16 = vpop.eup %1954 }
 0x91f   :  { %v1957_v19 = vpop.eup %1956  ;;  %v717_v23 = vmul.f32 %v1955_v16, %v715_v22 }
 0x920   :  { %v792_v27 = vmul.f32 %v1957_v19, %v790_v26 }
 0x97a   :  { %v720_v17 = vpop.permute.xlu0 %719 }
 0x97b   :  { %v722_v18 = vmul.f32 %v1955_v16, %v720_v17 }
 0x97d   :  { %724 = vrot.lane.b32.xlu0 %v722_v18, %s2029_s2 }
 0x980   :  { %v795_v20 = vpop.permute.xlu1 %794 }
 0x981   :  { %v797_v21 = vmul.f32 %v1957_v19, %v795_v20 }
 0x983   :  { %799 = vrot.lane.b32.xlu1 %v797_v21, %s2029_s2 }
 0x9ef   :  { %v725_v24 = vpop.permute.xlu0 %724 }
 0x9f0   :  { %v2248_v25 = vadd.f32 %v725_v24, %v717_v23 }
 0x9f2   :  { %1958 = vtanh.f32 %v2248_v25  ;;  %v883_v15 = vrot.slane %v2248_v25, 6 }
 0x9f5   :  { %v800_v28 = vpop.permute.xlu1 %799 }
 0x9f6   :  { %v2252_v29 = vadd.f32 %v800_v28, %v792_v27 }
 0x9f8   :  { %1960 = vtanh.f32 %v2252_v29 }
 0x9ff   :  { %v1959_v30 = vpop.eup %1958 }
 0xa00   :  { %730 = vrot.lane.b32.xlu0 %v1959_v30, %s2029_s2 }
 0xa05   :  { %v1961_v31 = vpop.eup %1960 }
 0xa06   :  { %805 = vrot.lane.b32.xlu1 %v1961_v31, %s2029_s2 }
 0xa72   :  { %v731_v32 = vpop.permute.xlu0 %730 }
 0xa73   :  { %v733_v33 = vmul.f32 %v1955_v16, %v731_v32 }
 0xa75   :  { %v2257_v34 = vpack.c.bf16 %v733_v33, %v733_v33 }
 0xa77   :  { %v828_v35 = vrot.slane %v2257_v34, 3 }
 0xa78   :  { %v806_v36 = vpop.permute.xlu1 %805 }
 0xa79   :  { %v808_v37 = vmul.f32 %v1957_v19, %v806_v36  ;;  %829 = vrot.lane.b32.xlu1 %v828_v35, %s2030_s17  ;;  %v960_v19 = vrot.slane %v2252_v29, 2 }
 0xa7b   :  { %v2261_v38 = vpack.c.bf16 %v808_v37, %v808_v37  ;;  %v995_v37 = vld [vmem:[#allocation2 + $0x18] sm:$0xc] }
 0xa7d   :  { %903 = vrot.lane.b32.xlu0 %v2261_v38, %s2030_s17 }
 0xaeb   :  { %v830_v39 = vpop.permute.xlu1 %829 }
 0xaec   :  { %1805 = vmatmul.mubr.msk.bf16.vlgmr.msra.gmra.mxu1 %vm70_vm1, %v830_v39 }
 0xaed   :  { %1817 = vmatpush3.bf16.msra.mxu1 %v2090_v6  ;;  %1820 = vmatprep.mubr.msk.bf16.mxu1 %vm2028_vm0, %v2026_v1 }
 0xaee   :  { %1818 = vmatprep.subr.bf16.mxu1 %v2026_v1 }
 0xaef   :  { %v904_v40 = vpop.permute.xlu0 %903 }
 0xaf0   :  { %1813 = vmatmul.mubr.msk.bf16.vlgmr.msra.gmra.mxu0 %vm70_vm1, %v904_v40 }
 0xaf1   :  { %1819 = vmatpush3.bf16.msra.mxu1 %v2100_v8  ;;  %1825 = vmatpush3.bf16.msra.mxu0 %v2105_v9 }
 0xaf2   :  { %1826 = vmatprep.subr.bf16.mxu0 %v2026_v1  ;;  %1828 = vmatprep.mubr.msk.bf16.mxu0 %vm2028_vm0, %v2026_v1 }
 0xaf3   :  { %1832 = vmatprep.subr.bf16.mxu1 %v2026_v1 }
 0xaf5   :  { %1827 = vmatpush3.bf16.msra.mxu0 %v2115_v10 }
 0xaf6   :  { %1840 = vmatprep.subr.bf16.mxu0 %v2026_v1 }
 0xbac   :  { %v868_v43 = vpop.f32.mrf.mxu1 }
 0xbad   :  { %v874_v44 = vadd.f32 %v868_v43, %v827_v41 }
 0xbae   :  { %v1806_v45 = vpop.f32.mrf.mxu1 }
 0xbaf   :  { %1962 = vtanh.f32 %v874_v44  ;;  %v1637_v60 = vmul.f32 -1.442695, %v874_v44 }
 0xbb0   :  { %v871_v47 = vpop.f32.mrf.mxu1  ;;  %v942_v48 = vpop.f32.mrf.mxu0 }
 0xbb1   :  { %v949_v49 = vrot.slane %v942_v48, 2  ;;  %v1072_v47 = vld [vmem:[#allocation2] sm:$0x30] }
 0xbb2   :  { %v1807_v52 = vpop.f32.mrf.mxu1  ;;  %v1814_v53 = vpop.f32.mrf.mxu0 }
 0xbb3   :  { %v951_v54 = vadd.f32 %v949_v49, %v902_v50 }
 0xbb4   :  { %v945_v56 = vpop.f32.mrf.mxu0 }
 0xbb5   :  { %1964 = vtanh.f32 %v951_v54  ;;  %v1639_v61 = vmul.f32 -1.442695, %v951_v54 }
 0xbb6   :  { %v1815_v57 = vpop.f32.mrf.mxu0  ;;  %1966 = vpow2.f32 %v1637_v60 }
 0xbb7   :  { %1968 = vpow2.f32 %v1639_v61 }
 0xbbc   :  { %v1963_v58 = vpop.eup %1962 }
 0xbbd   :  { %887 = vrot.lane.b32.xlu0 %v1963_v58, %s2029_s2 }
 0xbc2   :  { %v1965_v59 = vpop.eup %1964 }
 0xbc3   :  { %964 = vrot.lane.b32.xlu1 %v1965_v59, %s2029_s2  ;;  %v1967_v62 = vpop.eup %1966 }
 0xbc4   :  { %v878_v0 = vadd.f32 1.0, %v1967_v62  ;;  %v1969_v2 = vpop.eup %1968 }
 0xbc5   :  { %v955_v4 = vadd.f32 1.0, %v1969_v2 }
 0xbc6   :  { %1970 = vrcp.f32 %v878_v0 }
 0xbc7   :  { %1972 = vrcp.f32 %v955_v4 }
 0xbd3   :  { %v1971_v5 = vpop.eup %1970 }
 0xbd4   :  { %v1973_v12 = vpop.eup %1972  ;;  %v885_v16 = vmul.f32 %v1971_v5, %v883_v15 }
 0xbd5   :  { %v962_v20 = vmul.f32 %v1973_v12, %v960_v19 }
 0xc2f   :  { %v888_v7 = vpop.permute.xlu0 %887 }
 0xc30   :  { %v890_v11 = vmul.f32 %v1971_v5, %v888_v7 }
 0xc32   :  { %892 = vrot.lane.b32.xlu0 %v890_v11, %s2029_s2 }
 0xc35   :  { %v965_v13 = vpop.permute.xlu1 %964 }
 0xc36   :  { %v967_v14 = vmul.f32 %v1973_v12, %v965_v13 }
 0xc38   :  { %969 = vrot.lane.b32.xlu1 %v967_v14, %s2029_s2 }
 0xca4   :  { %v893_v17 = vpop.permute.xlu0 %892 }
 0xca5   :  { %v2284_v18 = vadd.f32 %v893_v17, %v885_v16 }
 0xca7   :  { %1974 = vtanh.f32 %v2284_v18  ;;  %v1053_v11 = vrot.slane %v2284_v18, 6 }
 0xcaa   :  { %v970_v21 = vpop.permute.xlu1 %969 }
 0xcab   :  { %v2288_v22 = vadd.f32 %v970_v21, %v962_v20 }
 0xcad   :  { %1976 = vtanh.f32 %v2288_v22  ;;  %v1131_v15 = vrot.slane %v2288_v22, 2 }
 0xcb4   :  { %v1975_v23 = vpop.eup %1974 }
 0xcb5   :  { %898 = vrot.lane.b32.xlu0 %v1975_v23, %s2029_s2 }
 0xcba   :  { %v1977_v24 = vpop.eup %1976 }
 0xcbb   :  { %975 = vrot.lane.b32.xlu1 %v1977_v24, %s2029_s2 }
 0xd27   :  { %v899_v25 = vpop.permute.xlu0 %898 }
 0xd28   :  { %v901_v26 = vmul.f32 %v1971_v5, %v899_v25 }
 0xd2a   :  { %v2293_v27 = vpack.c.bf16 %v901_v26, %v901_v26 }
 0xd2c   :  { %996 = vrot.lane.b32.xlu0 %v2293_v27, %s2030_s17 }
 0xd2d   :  { %v976_v28 = vpop.permute.xlu1 %975 }
 0xd2e   :  { %v978_v29 = vmul.f32 %v1973_v12, %v976_v28 }
 0xd30   :  { %v2297_v30 = vpack.c.bf16 %v978_v29, %v978_v29 }
 0xd32   :  { %v1073_v31 = vrot.slane %v2297_v30, 3 }
 0xd34   :  { %1074 = vrot.lane.b32.xlu1 %v1073_v31, %s2030_s17 }
 0xd9e   :  { %v997_v32 = vpop.permute.xlu0 %996 }
 0xd9f   :  { %1821 = vmatmul.mubr.msk.bf16.vlgmr.msra.gmra.mxu1 %vm70_vm1, %v997_v32 }
 0xda0   :  { %1833 = vmatpush3.bf16.msra.mxu1 %v2090_v6  ;;  %1836 = vmatprep.mubr.msk.bf16.mxu1 %vm2028_vm0, %v2026_v1 }
 0xda1   :  { %1834 = vmatprep.subr.bf16.mxu1 %v2026_v1 }
 0xda4   :  { %1835 = vmatpush3.bf16.msra.mxu1 %v2100_v8 }
 0xda5   :  { %1848 = vmatprep.subr.bf16.mxu1 %v2026_v1 }
 0xda6   :  { %v1075_v33 = vpop.permute.xlu1 %1074 }
 0xda7   :  { %1829 = vmatmul.mubr.msk.bf16.vlgmr.msra.gmra.mxu0 %vm70_vm1, %v1075_v33 }
 0xda8   :  { %1841 = vmatpush3.bf16.msra.mxu0 %v2105_v9  ;;  %1844 = vmatprep.mubr.msk.bf16.mxu0 %vm2028_vm0, %v2026_v1 }
 0xda9   :  { %1842 = vmatprep.subr.bf16.mxu0 %v2026_v1 }
 0xdac   :  { %1843 = vmatpush3.bf16.msra.mxu0 %v2115_v10 }
 0xdad   :  { %1856 = vmatprep.subr.bf16.mxu0 %v2026_v1 }
 0xe5f   :  { %v1035_v35 = vpop.f32.mrf.mxu1 }
 0xe60   :  { %v1042_v36 = vrot.slane %v1035_v35, 6  ;;  %v1166_v35 = vld [vmem:[#allocation2 + $0x18] sm:$0x30] }
 0xe61   :  { %v1822_v39 = vpop.f32.mrf.mxu1 }
 0xe62   :  { %v1044_v40 = vadd.f32 %v1042_v36, %v995_v37 }
 0xe63   :  { %v1038_v41 = vpop.f32.mrf.mxu1 }
 0xe64   :  { %1978 = vtanh.f32 %v1044_v40  ;;  %v1643_v56 = vmul.f32 -1.442695, %v1044_v40 }
 0xe65   :  { %v1823_v43 = vpop.f32.mrf.mxu1 }
 0xe66   :  { %v1244_v43 = vld [vmem:[#allocation2] sm:$0xc] }
 0xe67   :  { %v1113_v44 = vpop.f32.mrf.mxu0 }
 0xe68   :  { %v1120_v45 = vrot.slane %v1113_v44, 4 }
 0xe69   :  { %v1830_v48 = vpop.f32.mrf.mxu0 }
 0xe6a   :  { %v1122_v49 = vadd.f32 %v1120_v45, %v1072_v47 }
 0xe6b   :  { %v1116_v50 = vpop.f32.mrf.mxu0 }
 0xe6c   :  { %1980 = vtanh.f32 %v1122_v49  ;;  %v1645_v57 = vmul.f32 -1.442695, %v1122_v49 }
 0xe6d   :  { %v1831_v52 = vpop.f32.mrf.mxu0  ;;  %1982 = vpow2.f32 %v1643_v56 }
 0xe6e   :  { %1984 = vpow2.f32 %v1645_v57 }
 0xe71   :  { %v1979_v53 = vpop.eup %1978 }
 0xe72   :  { %1057 = vrot.lane.b32.xlu0 %v1979_v53, %s2029_s2 }
 0xe79   :  { %v1981_v54 = vpop.eup %1980 }
 0xe7a   :  { %1135 = vrot.lane.b32.xlu1 %v1981_v54, %s2029_s2  ;;  %v1983_v58 = vpop.eup %1982 }
 0xe7b   :  { %v1048_v59 = vadd.f32 1.0, %v1983_v58  ;;  %v1985_v60 = vpop.eup %1984 }
 0xe7c   :  { %v1126_v61 = vadd.f32 1.0, %v1985_v60 }
 0xe7d   :  { %1986 = vrcp.f32 %v1048_v59 }
 0xe7e   :  { %1988 = vrcp.f32 %v1126_v61 }
 0xe8a   :  { %v1987_v62 = vpop.eup %1986 }
 0xe8b   :  { %v1989_v4 = vpop.eup %1988  ;;  %v1055_v12 = vmul.f32 %v1987_v62, %v1053_v11 }
 0xe8c   :  { %v1133_v16 = vmul.f32 %v1989_v4, %v1131_v15 }
 0xee4   :  { %v1058_v0 = vpop.permute.xlu0 %1057 }
 0xee5   :  { %v1060_v2 = vmul.f32 %v1987_v62, %v1058_v0 }
 0xee7   :  { %1062 = vrot.lane.b32.xlu0 %v1060_v2, %s2029_s2 }
 0xeec   :  { %v1136_v5 = vpop.permute.xlu1 %1135 }
 0xeed   :  { %v1138_v7 = vmul.f32 %v1989_v4, %v1136_v5 }
 0xeef   :  { %1140 = vrot.lane.b32.xlu1 %v1138_v7, %s2029_s2 }
 0xf59   :  { %v1063_v13 = vpop.permute.xlu0 %1062 }
 0xf5a   :  { %v2320_v14 = vadd.f32 %v1063_v13, %v1055_v12 }
 0xf5c   :  { %1990 = vtanh.f32 %v2320_v14  ;;  %v1225_v0 = vrot.slane %v2320_v14, 6 }
 0xf61   :  { %v1141_v17 = vpop.permute.xlu1 %1140 }
 0xf62   :  { %v2324_v19 = vadd.f32 %v1141_v17, %v1133_v16 }
 0xf64   :  { %1992 = vtanh.f32 %v2324_v19  ;;  %v1303_v7 = vrot.slane %v2324_v19, 2 }
 0xf69   :  { %v1991_v20 = vpop.eup %1990 }
 0xf6a   :  { %1068 = vrot.lane.b32.xlu0 %v1991_v20, %s2029_s2 }
 0xf71   :  { %v1993_v21 = vpop.eup %1992 }
 0xf72   :  { %1146 = vrot.lane.b32.xlu1 %v1993_v21, %s2029_s2 }
 0xfdc   :  { %v1069_v18 = vpop.permute.xlu0 %1068 }
 0xfdd   :  { %v1071_v23 = vmul.f32 %v1987_v62, %v1069_v18 }
 0xfdf   :  { %v2329_v24 = vpack.c.bf16 %v1071_v23, %v1071_v23 }
 0xfe1   :  { %v1167_v25 = vrot.slane %v2329_v24, 1 }
 0xfe3   :  { %1168 = vrot.lane.b32.xlu0 %v1167_v25, %s2030_s17 }
 0xfe4   :  { %v1147_v22 = vpop.permute.xlu1 %1146 }
 0xfe5   :  { %v1149_v26 = vmul.f32 %v1989_v4, %v1147_v22 }
 0xfe7   :  { %v2333_v28 = vpack.c.bf16 %v1149_v26, %v1149_v26 }
 0xfe9   :  { %v1245_v29 = vrot.slane %v2333_v28, 2 }
 0xfeb   :  { %1246 = vrot.lane.b32.xlu1 %v1245_v29, %s2030_s17 }
0x1055   :  { %v1169_v31 = vpop.permute.xlu0 %1168 }
0x1056   :  { %1837 = vmatmul.mubr.msk.bf16.vlgmr.msra.gmra.mxu1 %vm70_vm1, %v1169_v31 }
0x1057   :  { %1849 = vmatpush3.bf16.msra.mxu1 %v2090_v6  ;;  %1852 = vmatprep.mubr.msk.bf16.mxu1 %vm2028_vm0, %v2026_v1 }
0x1058   :  { %1850 = vmatprep.subr.bf16.mxu1 %v2026_v1 }
0x105b   :  { %1851 = vmatpush3.bf16.msra.mxu1 %v2100_v8 }
0x105c   :  { %1864 = vmatprep.subr.bf16.mxu1 %v2026_v1 }
0x105d   :  { %v1247_v32 = vpop.permute.xlu1 %1246 }
0x105e   :  { %1845 = vmatmul.mubr.msk.bf16.vlgmr.msra.gmra.mxu0 %vm70_vm1, %v1247_v32  ;;  %v1338_v32 = vld [vmem:[#allocation2 + $0x18] sm:$0xc0] }
0x105f   :  { %1857 = vmatpush3.bf16.msra.mxu0 %v2105_v9  ;;  %1860 = vmatprep.mubr.msk.bf16.mxu0 %vm2028_vm0, %v2026_v1 }
0x1060   :  { %1858 = vmatprep.subr.bf16.mxu0 %v2026_v1 }
0x1063   :  { %1859 = vmatpush3.bf16.msra.mxu0 %v2115_v10 }
0x1116   :  { %v1207_v6 = vpop.f32.mrf.mxu1 }
0x1117   :  { %v1214_v33 = vrot.slane %v1207_v6, 4 }
0x1118   :  { %v1838_v36 = vpop.f32.mrf.mxu1 }
0x1119   :  { %v1216_v37 = vadd.f32 %v1214_v33, %v1166_v35 }
0x111a   :  { %v1210_v8 = vpop.f32.mrf.mxu1 }
0x111b   :  { %1994 = vtanh.f32 %v1216_v37  ;;  %v1649_v49 = vmul.f32 -1.442695, %v1216_v37  ;;  %v1416_v37 = vld [vmem:[#allocation2] sm:$0x3] }
0x111c   :  { %v1839_v39 = vpop.f32.mrf.mxu1 }
0x111e   :  { %v1285_v40 = vpop.f32.mrf.mxu0 }
0x111f   :  { %v1292_v41 = vrot.slane %v1285_v40, 6 }
0x1120   :  { %v1846_v44 = vpop.f32.mrf.mxu0 }
0x1121   :  { %v1294_v9 = vadd.f32 %v1292_v41, %v1244_v43 }
0x1122   :  { %v1288_v45 = vpop.f32.mrf.mxu0 }
0x1123   :  { %1996 = vtanh.f32 %v1294_v9  ;;  %v1651_v50 = vmul.f32 -1.442695, %v1294_v9 }
0x1124   :  { %v1847_v47 = vpop.f32.mrf.mxu0  ;;  %1998 = vpow2.f32 %v1649_v49 }
0x1125   :  { %2000 = vpow2.f32 %v1651_v50 }
0x1128   :  { %v1995_v48 = vpop.eup %1994 }
0x1129   :  { %1229 = vrot.lane.b32.xlu0 %v1995_v48, %s2029_s2 }
0x1130   :  { %v1997_v10 = vpop.eup %1996 }
0x1131   :  { %1307 = vrot.lane.b32.xlu1 %v1997_v10, %s2029_s2  ;;  %v1999_v52 = vpop.eup %1998 }
0x1132   :  { %v1220_v53 = vadd.f32 1.0, %v1999_v52  ;;  %v2001_v54 = vpop.eup %2000 }
0x1133   :  { %v1298_v56 = vadd.f32 1.0, %v2001_v54 }
0x1134   :  { %2002 = vrcp.f32 %v1220_v53 }
0x1135   :  { %2004 = vrcp.f32 %v1298_v56 }
0x1141   :  { %v2003_v57 = vpop.eup %2002 }
0x1142   :  { %v2005_v60 = vpop.eup %2004  ;;  %v1227_v2 = vmul.f32 %v2003_v57, %v1225_v0 }
0x1143   :  { %v1305_v11 = vmul.f32 %v2005_v60, %v1303_v7 }
0x119b   :  { %v1230_v58 = vpop.permute.xlu0 %1229 }
0x119c   :  { %v1232_v59 = vmul.f32 %v2003_v57, %v1230_v58 }
0x119e   :  { %1234 = vrot.lane.b32.xlu0 %v1232_v59, %s2029_s2 }
0x11a3   :  { %v1308_v61 = vpop.permute.xlu1 %1307 }
0x11a4   :  { %v1310_v62 = vmul.f32 %v2005_v60, %v1308_v61 }
0x11a6   :  { %1312 = vrot.lane.b32.xlu1 %v1310_v62, %s2029_s2 }
0x1210   :  { %v1235_v4 = vpop.permute.xlu0 %1234 }
0x1211   :  { %v2355_v5 = vadd.f32 %v1235_v4, %v1227_v2 }
0x1213   :  { %2006 = vtanh.f32 %v2355_v5  ;;  %v1397_v59 = vrot.slane %v2355_v5, 6 }
0x1218   :  { %v1313_v12 = vpop.permute.xlu1 %1312 }
0x1219   :  { %v2359_v13 = vadd.f32 %v1313_v12, %v1305_v11 }
0x121b   :  { %2008 = vtanh.f32 %v2359_v13  ;;  %v1472_v0 = vrot.slane %v2359_v13, 2 }
0x1220   :  { %v2007_v15 = vpop.eup %2006 }
0x1221   :  { %1240 = vrot.lane.b32.xlu0 %v2007_v15, %s2029_s2 }
0x1228   :  { %v2009_v16 = vpop.eup %2008 }
0x1229   :  { %1318 = vrot.lane.b32.xlu1 %v2009_v16, %s2029_s2 }
0x1293   :  { %v1241_v14 = vpop.permute.xlu0 %1240 }
0x1294   :  { %v1243_v17 = vmul.f32 %v2003_v57, %v1241_v14 }
0x1296   :  { %v2364_v20 = vpack.c.bf16 %v1243_v17, %v1243_v17 }
0x1298   :  { %v1339_v21 = vrot.slane %v2364_v20, 2 }
0x129a   :  { %1340 = vrot.lane.b32.xlu0 %v1339_v21, %s2030_s17 }
0x129b   :  { %v1319_v19 = vpop.permute.xlu1 %1318 }
0x129c   :  { %v1321_v18 = vmul.f32 %v2005_v60, %v1319_v19 }
0x129e   :  { %v2368_v23 = vpack.c.bf16 %v1321_v18, %v1321_v18 }
0x12a0   :  { %v1417_v25 = vrot.slane %v2368_v23, 1 }
0x12a2   :  { %1418 = vrot.lane.b32.xlu1 %v1417_v25, %s2030_s17 }
0x130c   :  { %v1341_v22 = vpop.permute.xlu0 %1340 }
0x130d   :  { %1853 = vmatmul.mubr.msk.bf16.vlgmr.msra.gmra.mxu1 %vm70_vm1, %v1341_v22 }
0x130e   :  { %1872 = vmatprep.mubr.msk.bf16.mxu1 %vm2028_vm0, %v2026_v1 }
0x1314   :  { %v1419_v26 = vpop.permute.xlu1 %1418 }
0x1315   :  { %1861 = vmatmul.mubr.msk.bf16.vlgmr.msra.gmra.mxu0 %vm70_vm1, %v1419_v26 }
0x13cd   :  { %v1379_v29 = vpop.f32.mrf.mxu1 }
0x13ce   :  { %v1386_v31 = vrot.slane %v1379_v29, 2  ;;  %v1660_v29 = vld [vmem:[%s2460_s6] ss:$0 sm:$0xff] }
0x13cf   :  { %v1854_v6 = vpop.f32.mrf.mxu1 }
0x13d0   :  { %v1388_v33 = vadd.f32 %v1386_v31, %v1338_v32 }
0x13d1   :  { %v1382_v35 = vpop.f32.mrf.mxu1 }
0x13d2   :  { %2010 = vtanh.f32 %v1388_v33  ;;  %v1655_v45 = vmul.f32 -1.442695, %v1388_v33 }
0x13d3   :  { %v1855_v36 = vpop.f32.mrf.mxu1 }
0x13d5   :  { %v1457_v8 = vpop.f32.mrf.mxu0 }
0x13d6   :  { %v1463_v39 = vadd.f32 %v1457_v8, %v1416_v37 }
0x13d7   :  { %v1862_v40 = vpop.f32.mrf.mxu0 }
0x13d8   :  { %2012 = vtanh.f32 %v1463_v39  ;;  %v1657_v47 = vmul.f32 -1.442695, %v1463_v39 }
0x13d9   :  { %v1460_v41 = vpop.f32.mrf.mxu0  ;;  %2014 = vpow2.f32 %v1655_v45 }
0x13da   :  { %2016 = vpow2.f32 %v1657_v47 }
0x13db   :  { %v1863_v43 = vpop.f32.mrf.mxu0 }
0x13df   :  { %v2011_v44 = vpop.eup %2010 }
0x13e0   :  { %1401 = vrot.lane.b32.xlu0 %v2011_v44, %s2029_s2 }
0x13e5   :  { %v2013_v9 = vpop.eup %2012 }
0x13e6   :  { %1476 = vrot.lane.b32.xlu1 %v2013_v9, %s2029_s2  ;;  %v2015_v48 = vpop.eup %2014 }
0x13e7   :  { %v1392_v10 = vadd.f32 1.0, %v2015_v48  ;;  %v2017_v49 = vpop.eup %2016 }
0x13e8   :  { %v1467_v50 = vadd.f32 1.0, %v2017_v49 }
0x13e9   :  { %2018 = vrcp.f32 %v1392_v10 }
0x13ea   :  { %2020 = vrcp.f32 %v1467_v50 }
0x13f6   :  { %v2019_v52 = vpop.eup %2018 }
0x13f7   :  { %v2021_v56 = vpop.eup %2020  ;;  %v1399_v60 = vmul.f32 %v2019_v52, %v1397_v59 }
0x13f8   :  { %v1474_v2 = vmul.f32 %v2021_v56, %v1472_v0 }
0x1452   :  { %v1402_v53 = vpop.permute.xlu0 %1401 }
0x1453   :  { %v1404_v54 = vmul.f32 %v2019_v52, %v1402_v53 }
0x1455   :  { %1406 = vrot.lane.b32.xlu0 %v1404_v54, %s2029_s2 }
0x1458   :  { %v1477_v57 = vpop.permute.xlu1 %1476 }
0x1459   :  { %v1479_v58 = vmul.f32 %v2021_v56, %v1477_v57 }
0x145b   :  { %1481 = vrot.lane.b32.xlu1 %v1479_v58, %s2029_s2 }
0x14c7   :  { %v1407_v61 = vpop.permute.xlu0 %1406 }
0x14c8   :  { %v1409_v62 = vadd.f32 %v1407_v61, %v1399_v60 }
0x14ca   :  { %2022 = vtanh.f32 %v1409_v62 }
0x14cd   :  { %v1482_v4 = vpop.permute.xlu1 %1481 }
0x14ce   :  { %v1484_v7 = vadd.f32 %v1482_v4, %v1474_v2 }
0x14d0   :  { %2024 = vtanh.f32 %v1484_v7 }
0x14d7   :  { %v2023_v11 = vpop.eup %2022 }
0x14d8   :  { %1412 = vrot.lane.b32.xlu0 %v2023_v11, %s2029_s2 }
0x14dc   :  { %295 = vrot.lane.b32.xlu0 %v2149_v63, %s2030_s17  ;;  %v1893_v63 = vld [vmem:[%s2459_s5 + $0x18] sm:$0xff]  }
0x14dd   :  { %v2025_v12 = vpop.eup %2024  ;;  %1865 = vmatpush3.bf16.msra.mxu1 %v1893_v63 }
0x14de   :  { %1487 = vrot.lane.b32.xlu1 %v2025_v12, %s2029_s2  ;;  %1866 = vmatprep.subr.bf16.mxu1 %v2026_v1 }
0x14e0   :  { %468 = vrot.lane.b32.xlu0 %v2185_v51, %s2030_s17  ;;  %v1895_v51 = vld [vmem:[%s2459_s5 + $0x8] sm:$0xff]  }
0x14e2   :  { %304 = vrot.lane.b32.xlu1 %v2153_v3, %s2031_s18  ;;  %v1894_v3 = vld [vmem:[%s2459_s5 + $0x10] sm:$0xff]  }
0x14e3   :  { %1867 = vmatpush3.bf16.msra.mxu1 %v1894_v3 }
0x14e4   :  { %642 = vrot.lane.b32.xlu0 %v2221_v42, %s2030_s17  ;;  %1868 = vmatprep.subr.bf16.mxu1 %v2026_v1 }
0x14e6   :  { %477 = vrot.lane.b32.xlu1 %v2189_v55, %s2031_s18 }
0x14e7   :  { %1869 = vmatpush3.bf16.msra.mxu1 %v1895_v51 }
0x14e8   :  { %813 = vrot.lane.b32.xlu0 %v2257_v34, %s2030_s17  ;;  %1870 = vmatprep.subr.bf16.mxu1 %v2026_v1 }
0x14ea   :  { %651 = vrot.lane.b32.xlu1 %v2225_v46, %s2031_s18  ;;  %v1896_v46 = vld [vmem:[%s2459_s5] sm:$0xff]  }
0x14eb   :  { %1871 = vmatpush3.bf16.msra.mxu1 %v1896_v46 }
0x14ec   :  { %983 = vrot.lane.b32.xlu0 %v2293_v27, %s2030_s17 }
0x14ee   :  { %822 = vrot.lane.b32.xlu1 %v2261_v38, %s2031_s18 }
0x14f0   :  { %1154 = vrot.lane.b32.xlu0 %v2329_v24, %s2030_s17 }
0x14f2   :  { %991 = vrot.lane.b32.xlu1 %v2297_v30, %s2031_s18 }
0x14f4   :  { %1326 = vrot.lane.b32.xlu0 %v2364_v20, %s2030_s17 }
0x14f6   :  { %1162 = vrot.lane.b32.xlu1 %v2333_v28, %s2031_s18 }
0x14fa   :  { %1334 = vrot.lane.b32.xlu1 %v2368_v23, %s2031_s18 }
0x154a   :  { %v1413_v55 = vpop.permute.xlu0 %1412 }
0x154b   :  { %v1415_v42 = vmul.f32 %v2019_v52, %v1413_v55 }
0x154d   :  { %v1681_v34 = vpack.c.bf16 %v1415_v42, %v1415_v42 }
0x154e   :  { %v296_v38 = vpop.permute.xlu0 %295 }
0x154f   :  { %299 = vst.msk [vmem:[#allocation3] sm:$0x1] %vm298_vm2, %v296_v38  ;;  %1495 = vrot.lane.b32.xlu0 %v1681_v34, %s2030_s17 }
0x1550   :  { %v1488_v27 = vpop.permute.xlu1 %1487 }
0x1551   :  { %v1490_v30 = vmul.f32 %v2021_v56, %v1488_v27 }
0x1552   :  { %v469_v24 = vpop.permute.xlu0 %468 }
0x1553   :  { %v1682_v28 = vpack.c.bf16 %v1490_v30, %v1490_v30  ;;  %472 = vst.msk [vmem:[#allocation3] sm:$0x2] %vm471_vm3, %v469_v24 }
0x1554   :  { %v305_v5 = vpop.permute.xlu1 %304 }
0x1555   :  { %308 = vst.msk [vmem:[#allocation3 + $0x4] sm:$0x8] %vm307_vm4, %v305_v5  ;;  %1503 = vrot.lane.b32.xlu1 %v1682_v28, %s2031_s18 }
0x1556   :  { %v643_v1 = vpop.permute.xlu0 %642 }
0x1557   :  { %646 = vst.msk [vmem:[#allocation3] sm:$0x4] %vm645_vm5, %v643_v1 }
0x1558   :  { %v478_v13 = vpop.permute.xlu1 %477 }
0x1559   :  { %481 = vst.msk [vmem:[#allocation3 + $0x4] sm:$0x4] %vm480_vm6, %v478_v13 }
0x155a   :  { %v814_v15 = vpop.permute.xlu0 %813 }
0x155b   :  { %817 = vst.msk [vmem:[#allocation3] sm:$0x8] %vm816_vm7, %v814_v15 }
0x155c   :  { %v652_v16 = vpop.permute.xlu1 %651 }
0x155d   :  { %655 = vst.msk [vmem:[#allocation3 + $0x4] sm:$0x2] %vm654_vm8, %v652_v16 }
0x155e   :  { %v984_v14 = vpop.permute.xlu0 %983 }
0x1560   :  { %v823_v17 = vpop.permute.xlu1 %822 }
0x1561   :  { %826 = vst.msk [vmem:[#allocation3 + $0x4] sm:$0x1] %vm825_vm9, %v823_v17 }
0x1562   :  { %986 = vst.msk [vmem:[#allocation3 + $0x4] sm:$0x1] %vm298_vm2, %v984_v14  ;;  %v1155_v20 = vpop.permute.xlu0 %1154 }
0x1563   :  { %1157 = vst.msk [vmem:[#allocation3 + $0x4] sm:$0x2] %vm471_vm3, %v1155_v20 }
0x1564   :  { %v992_v21 = vpop.permute.xlu1 %991 }
0x1565   :  { %994 = vst.msk [vmem:[#allocation3] sm:$0x8] %vm307_vm4, %v992_v21 }
0x1566   :  { %v1327_v19 = vpop.permute.xlu0 %1326 }
0x1567   :  { %1329 = vst.msk [vmem:[#allocation3 + $0x4] sm:$0x4] %vm645_vm5, %v1327_v19 }
0x1568   :  { %v1163_v18 = vpop.permute.xlu1 %1162 }
0x1569   :  { %1165 = vst.msk [vmem:[#allocation3] sm:$0x4] %vm480_vm6, %v1163_v18 }
0x156c   :  { %v1335_v23 = vpop.permute.xlu1 %1334 }
0x156d   :  { %1337 = vst.msk [vmem:[#allocation3] sm:$0x2] %vm654_vm8, %v1335_v23 }
0x15c1   :  { %v1496_v25 = vpop.permute.xlu0 %1495 }
0x15c2   :  { %1498 = vst.msk [vmem:[#allocation3 + $0x4] sm:$0x8] %vm816_vm7, %v1496_v25 }
0x15c7   :  { %v1504_v22 = vpop.permute.xlu1 %1503 }
0x15c8   :  { %1506 = vst.msk [vmem:[#allocation3] sm:$0x1] %vm825_vm9, %v1504_v22 }
0x15cf   :  { %v1897_v26 = vld [vmem:[#allocation3] sm:$0xff]  }
0x15d0   :  { %1873 = vmatmul.mubr.msk.bf16.vlgmr.msra.gmra.mxu1 %vm1553_vm10, %v1897_v26 }
0x1690   :  { %v1591_v31 = vpop.f32.mrf.mxu1 }
0x1691   :  { %v1592_v32 = vadd.f32 %v1660_v29, %v1591_v31 }
0x1692   :  { %v1874_v6 = vpop.f32.mrf.mxu1 }
0x1693   :  { %1598 = vst [vmem:[%s2461_s7] sm:$0xff] %v1592_v32 }
0x1694   :  { %v1594_v33 = vpop.f32.mrf.mxu1 }
0x1695   :  { %v1595_v35 = vadd.f32 %v1660_v29, %v1594_v33 }
0x1696   :  { %v1875_v36 = vpop.f32.mrf.mxu1 }
0x1697   :  { %1599 = vst [vmem:[%s2461_s7 + $0x8] sm:$0xff] %v1595_v35 }

</bundles_post_ra>
